<compile_context>
chip_gen: v6e
topology: v6e:2x2x1
jax: 0.10.0
libtpu: 0.0.40
codegen_flags: <defaults>
</compile_context>

<pallas_src>
import math

import jax
import jax.numpy as jnp
from jax.experimental import pallas as pl
from jax.experimental.pallas import tpu as pltpu


def _layernorm(x, gamma, beta, eps=1e-5):
    # PyTorch nn.LayerNorm: biased variance, eps inside sqrt. All in f32.
    mean = jnp.mean(x, axis=-1, keepdims=True)
    var = jnp.mean((x - mean) ** 2, axis=-1, keepdims=True)
    return (x - mean) * jax.lax.rsqrt(var + eps) * gamma + beta


def _clip_layer_kernel(
    x_ref,
    ln1_g_ref, ln1_b_ref,
    wq_ref, bq_ref,            # (H, D, dh) bf16 (scale folded in), (H, 1, dh) f32
    wk_ref, bk_ref,
    wv_ref, bv_ref,
    wo_ref, bo_ref,            # (H, dh, D) bf16, (1, D) f32
    ln2_g_ref, ln2_b_ref,
    w1_ref, b1_ref,            # (D, 4D) bf16, (1, 4D) f32
    w2_ref, b2_ref,            # (4D, D) bf16, (1, D) f32
    o_ref,
):
    x = x_ref[0].astype(jnp.float32)                       # (S, D), residual in f32
    S, D = x.shape
    H = wq_ref.shape[0]

    # ---- LayerNorm 1 (f32) ----
    h = _layernorm(x, ln1_g_ref[0], ln1_b_ref[0])
    hb = jnp.broadcast_to(h.astype(jnp.bfloat16), (H, S, D))  # head-batched view

    # ---- QKV projections: bf16 x bf16 -> f32 accumulation (full-depth D) ----
    q = jnp.einsum("hsd,hde->hse", hb, wq_ref[...],
                   preferred_element_type=jnp.float32) + bq_ref[...]
    k = jnp.einsum("hsd,hde->hse", hb, wk_ref[...],
                   preferred_element_type=jnp.float32) + bk_ref[...]
    v = jnp.einsum("hsd,hde->hse", hb, wv_ref[...],
                   preferred_element_type=jnp.float32) + bv_ref[...]

    # ---- Causal attention, softmax in f32 (q already scaled by 1/sqrt(dh)) ----
    s = jnp.einsum("hqd,hkd->hqk", q.astype(jnp.bfloat16), k.astype(jnp.bfloat16),
                   preferred_element_type=jnp.float32)      # (H, S, S)
    row = jax.lax.broadcasted_iota(jnp.int32, (1, S, S), 1)
    col = jax.lax.broadcasted_iota(jnp.int32, (1, S, S), 2)
    s = jnp.where(col > row, -jnp.inf, s)                   # triu(1) mask
    s = s - jnp.max(s, axis=-1, keepdims=True)
    p = jnp.exp(s)
    p = p * pl.reciprocal(jnp.sum(p, axis=-1, keepdims=True), approx=True)

    o = jnp.einsum("hqk,hkd->hqd", p.astype(jnp.bfloat16), v.astype(jnp.bfloat16),
                   preferred_element_type=jnp.float32)      # (H, S, dh)

    # Output projection: per-head matmul then sum over heads
    # (identical to concat(heads) @ W_out, no concatenate / lane-offset copies).
    attn = jnp.einsum("hqd,hde->hqe", o.astype(jnp.bfloat16), wo_ref[...],
                      preferred_element_type=jnp.float32)   # (H, S, D)
    x = jnp.sum(attn, axis=0) + bo_ref[0] + x               # residual 1 (f32)

    # ---- LayerNorm 2 + MLP (quickGELU), matmuls bf16, pointwise f32 ----
    h2 = _layernorm(x, ln2_g_ref[0], ln2_b_ref[0]).astype(jnp.bfloat16)
    ff = jnp.dot(h2, w1_ref[...], preferred_element_type=jnp.float32) + b1_ref[0]
    ff = ff * jax.nn.sigmoid(1.702 * ff)                    # quickGELU in f32
    ff = jnp.dot(ff.astype(jnp.bfloat16), w2_ref[...],
                 preferred_element_type=jnp.float32) + b2_ref[0]

    o_ref[0] = (ff + x).astype(o_ref.dtype)                 # residual 2


def clip_layer(x, params, n_head):
    B, S, D = x.shape
    dh = D // n_head
    scale = 1.0 / math.sqrt(dh)
    bf16 = jnp.bfloat16

    def head_w(w):   # (D, D) with head-major output columns -> (H, D, dh)
        return jnp.transpose(w.reshape(D, n_head, dh), (1, 0, 2))

    def head_b(b):   # (1, D) -> (H, 1, dh)
        return jnp.transpose(b.reshape(1, n_head, dh), (1, 0, 2))

    w_in, b_in = params["w_in"], params["b_in"]
    # Fold 1/sqrt(dh) into Wq/bq (mathematically identical; mask stays -inf).
    wq = head_w(w_in[:, 0 * D:1 * D] * scale).astype(bf16)
    wk = head_w(w_in[:, 1 * D:2 * D]).astype(bf16)
    wv = head_w(w_in[:, 2 * D:3 * D]).astype(bf16)
    bq = head_b(b_in[:, 0 * D:1 * D] * scale)
    bk = head_b(b_in[:, 1 * D:2 * D])
    bv = head_b(b_in[:, 2 * D:3 * D])
    wo = params["w_out"].reshape(n_head, dh, D).astype(bf16)

    # Weights in bf16 (MXU-native, halves VMEM); biases & LN params stay f32.
    param_list = [
        params["ln1_g"], params["ln1_b"],
        wq, bq, wk, bk, wv, bv,
        wo, params["b_out"],
        params["ln2_g"], params["ln2_b"],
        params["w1"].astype(bf16), params["b1"],
        params["w2"].astype(bf16), params["b2"],
    ]

    # Explicit VMEM budget: weights (worst case double-buffered) + f32/bf16
    # intermediates + pipelined x/out blocks, clamped to a range valid on
    # v5e/v6e (128 MiB physical) and v7x (64 MiB physical).
    weight_bytes = sum(int(p.size) * p.dtype.itemsize for p in param_list)
    act_bytes = 4 * (12 * S * D + 3 * n_head * S * S + 2 * S * 4 * D)
    io_bytes = 4 * S * D * x.dtype.itemsize
    vmem_limit = int(min(max(2 * weight_bytes + act_bytes + io_bytes + (8 << 20),
                             32 << 20), 64 << 20))

    def weight_spec(p, single_buffer):
        nd = p.ndim
        idx = lambda b, _nd=nd: (0,) * _nd
        if single_buffer:
            # Grid-invariant blocks don't need double buffering.
            return pl.BlockSpec(p.shape, idx, pipeline_mode=pl.Buffered(1))
        return pl.BlockSpec(p.shape, idx)

    def run(single_buffer_weights):
        in_specs = [pl.BlockSpec((1, S, D), lambda b: (b, 0, 0))]
        in_specs += [weight_spec(p, single_buffer_weights) for p in param_list]
        return pl.pallas_call(
            _clip_layer_kernel,
            out_shape=jax.ShapeDtypeStruct((B, S, D), x.dtype),
            grid=(B,),
            in_specs=in_specs,
            out_specs=pl.BlockSpec((1, S, D), lambda b: (b, 0, 0)),
            compiler_params=pltpu.CompilerParams(
                dimension_semantics=("parallel",),
                vmem_limit_bytes=vmem_limit,
            ),
        )(x, *param_list)

    try:
        # Preferred: single-buffer the constant weight blocks (halves weight VMEM).
        return jax.block_until_ready(run(True))
    except Exception:
        # Fallback if pipeline_mode=pl.Buffered(1) is rejected on this jax build.
        return run(False)


# ---------------- pure-JAX f32 reference (mirrors the PyTorch forward) -------
def clip_layer_ref(x, p, n_head):
    B, S, D = x.shape
    dh = D // n_head

    def ln(v, g, b, eps=1e-5):
        m = jnp.mean(v, -1, keepdims=True)
        var = jnp.mean((v - m) ** 2, -1, keepdims=True)
        return (v - m) / jnp.sqrt(var + eps) * g + b

    res = x
    h = ln(x, p["ln1_g"][0], p["ln1_b"][0])
    qkv = h @ p["w_in"] + p["b_in"][0]
    q, k, v = jnp.split(qkv, 3, axis=-1)
    q = q.reshape(B, S, n_head, dh).transpose(0, 2, 1, 3)
    k = k.reshape(B, S, n_head, dh).transpose(0, 2, 1, 3)
    v = v.reshape(B, S, n_head, dh).transpose(0, 2, 1, 3)
    w = jnp.einsum("bhqd,bhkd->bhqk", q, k)
    mask = jnp.triu(jnp.ones((S, S), bool), 1)
    w = jnp.where(mask, -jnp.inf, w) / math.sqrt(dh)
    w = jax.nn.softmax(w, axis=-1)
    o = jnp.einsum("bhqk,bhkd->bhqd", w, v).transpose(0, 2, 1, 3).reshape(B, S, D)
    o = o @ p["w_out"] + p["b_out"][0]
    x = o + res
    res = x
    h = ln(x, p["ln2_g"][0], p["ln2_b"][0])
    ff = h @ p["w1"] + p["b1"][0]
    ff = ff * jax.nn.sigmoid(1.702 * ff)
    ff = ff @ p["w2"] + p["b2"][0]
    return ff + res


if __name__ == "__main__":
    B, S, D, H = 2, 8, 32, 4
    key = jax.random.PRNGKey(0)
    ks = jax.random.split(key, 8)

    x = jax.random.normal(ks[0], (B, S, D), jnp.float32)

    # Deterministic synthetic parameters (Linear weights stored as (in, out)).
    params = {
        "ln1_g": jnp.ones((1, D), jnp.float32),
        "ln1_b": jnp.zeros((1, D), jnp.float32),
        "w_in": 0.05 * jax.random.normal(ks[1], (D, 3 * D), jnp.float32),
        "b_in": 0.05 * jax.random.normal(ks[2], (1, 3 * D), jnp.float32),
        "w_out": 0.05 * jax.random.normal(ks[3], (D, D), jnp.float32),
        "b_out": 0.05 * jax.random.normal(ks[4], (1, D), jnp.float32),
        "ln2_g": jnp.ones((1, D), jnp.float32),
        "ln2_b": jnp.zeros((1, D), jnp.float32),
        "w1": 0.05 * jax.random.normal(ks[5], (D, 4 * D), jnp.float32),
        "b1": 0.05 * jax.random.normal(ks[6], (1, 4 * D), jnp.float32),
        "w2": 0.05 * jax.random.normal(ks[7], (4 * D, D), jnp.float32),
        "b2": jnp.zeros((1, D), jnp.float32),
    }

    out = jax.block_until_ready(clip_layer(x, params, H))
    ref = clip_layer_ref(x, params, H)

    assert out.shape == (B, S, D)
    # Kernel matmuls use bf16 operands (f32 accumulation) + approx softmax
    # reciprocal, so compare against the f32 reference at bf16-level tolerance.
    max_err = float(jnp.max(jnp.abs(out - ref)))
    assert max_err < 2e-2, max_err
    print("KERNEL_OK")
</pallas_src>

<mosaic_0001>
module attributes {stable_mosaic.version = 11 : i64} {
  func.func @_clip_layer_kernel(%arg0: i32, %arg1: memref<1x8x32xf32, #tpu.memory_space<vmem>>, %arg2: memref<1x32xf32, #tpu.memory_space<vmem>>, %arg3: memref<1x32xf32, #tpu.memory_space<vmem>>, %arg4: memref<4x32x8xbf16, #tpu.memory_space<vmem>>, %arg5: memref<4x1x8xf32, #tpu.memory_space<vmem>>, %arg6: memref<4x32x8xbf16, #tpu.memory_space<vmem>>, %arg7: memref<4x1x8xf32, #tpu.memory_space<vmem>>, %arg8: memref<4x32x8xbf16, #tpu.memory_space<vmem>>, %arg9: memref<4x1x8xf32, #tpu.memory_space<vmem>>, %arg10: memref<4x8x32xbf16, #tpu.memory_space<vmem>>, %arg11: memref<1x32xf32, #tpu.memory_space<vmem>>, %arg12: memref<1x32xf32, #tpu.memory_space<vmem>>, %arg13: memref<1x32xf32, #tpu.memory_space<vmem>>, %arg14: memref<32x128xbf16, #tpu.memory_space<vmem>>, %arg15: memref<1x128xf32, #tpu.memory_space<vmem>>, %arg16: memref<128x32xbf16, #tpu.memory_space<vmem>>, %arg17: memref<1x32xf32, #tpu.memory_space<vmem>>, %arg18: memref<1x8x32xf32, #tpu.memory_space<vmem>>) attributes {dimension_semantics = [#tpu.dimension_semantics<parallel>], iteration_bounds = array<i64: 2>, scalar_prefetch = 0 : i64, scratch_operands = 0 : i64, tpu.core_type = #tpu.core_type<tc>, window_params = [{transform_indices = @transform_0, window_bounds = array<i64: 1, 8, 32>}, {pipeline_mode = #tpu.pipeline_mode<synchronous>, transform_indices = @transform_1, window_bounds = array<i64: 1, 32>}, {pipeline_mode = #tpu.pipeline_mode<synchronous>, transform_indices = @transform_2, window_bounds = array<i64: 1, 32>}, {pipeline_mode = #tpu.pipeline_mode<synchronous>, transform_indices = @transform_3, window_bounds = array<i64: 4, 32, 8>}, {pipeline_mode = #tpu.pipeline_mode<synchronous>, transform_indices = @transform_4, window_bounds = array<i64: 4, 1, 8>}, {pipeline_mode = #tpu.pipeline_mode<synchronous>, transform_indices = @transform_5, window_bounds = array<i64: 4, 32, 8>}, {pipeline_mode = #tpu.pipeline_mode<synchronous>, transform_indices = @transform_6, window_bounds = array<i64: 4, 1, 8>}, {pipeline_mode = #tpu.pipeline_mode<synchronous>, transform_indices = @transform_7, window_bounds = array<i64: 4, 32, 8>}, {pipeline_mode = #tpu.pipeline_mode<synchronous>, transform_indices = @transform_8, window_bounds = array<i64: 4, 1, 8>}, {pipeline_mode = #tpu.pipeline_mode<synchronous>, transform_indices = @transform_9, window_bounds = array<i64: 4, 8, 32>}, {pipeline_mode = #tpu.pipeline_mode<synchronous>, transform_indices = @transform_10, window_bounds = array<i64: 1, 32>}, {pipeline_mode = #tpu.pipeline_mode<synchronous>, transform_indices = @transform_11, window_bounds = array<i64: 1, 32>}, {pipeline_mode = #tpu.pipeline_mode<synchronous>, transform_indices = @transform_12, window_bounds = array<i64: 1, 32>}, {pipeline_mode = #tpu.pipeline_mode<synchronous>, transform_indices = @transform_13, window_bounds = array<i64: 32, 128>}, {pipeline_mode = #tpu.pipeline_mode<synchronous>, transform_indices = @transform_14, window_bounds = array<i64: 1, 128>}, {pipeline_mode = #tpu.pipeline_mode<synchronous>, transform_indices = @transform_15, window_bounds = array<i64: 128, 32>}, {pipeline_mode = #tpu.pipeline_mode<synchronous>, transform_indices = @transform_16, window_bounds = array<i64: 1, 32>}, {transform_indices = @transform_17, window_bounds = array<i64: 1, 8, 32>}]} {
    %c0 = arith.constant 0 : index
    %c0_0 = arith.constant 0 : index
    %c0_1 = arith.constant 0 : index
    %0 = vector.load %arg1[%c0, %c0_0, %c0_1] : memref<1x8x32xf32, #tpu.memory_space<vmem>>, vector<1x8x32xf32>
    %1 = vector.shape_cast %0 : vector<1x8x32xf32> to vector<8x32xf32>
    %c0_2 = arith.constant 0 : index
    %c0_3 = arith.constant 0 : index
    %2 = vector.load %arg2[%c0_2, %c0_3] : memref<1x32xf32, #tpu.memory_space<vmem>>, vector<1x32xf32>
    %3 = vector.shape_cast %2 : vector<1x32xf32> to vector<32xf32>
    %c0_4 = arith.constant 0 : index
    %c0_5 = arith.constant 0 : index
    %4 = vector.load %arg3[%c0_4, %c0_5] : memref<1x32xf32, #tpu.memory_space<vmem>>, vector<1x32xf32>
    %5 = vector.shape_cast %4 : vector<1x32xf32> to vector<32xf32>
    %cst = arith.constant dense<0.000000e+00> : vector<8xf32>
    %6 = vector.multi_reduction <add>, %1, %cst [1] : vector<8x32xf32> to vector<8xf32>
    %7 = vector.shape_cast %6 : vector<8xf32> to vector<8x1xf32>
    %cst_6 = arith.constant 3.200000e+01 : f32
    %8 = vector.broadcast %cst_6 : f32 to vector<8x1xf32>
    %9 = arith.divf %7, %8 : vector<8x1xf32>
    %10 = vector.broadcast %9 : vector<8x1xf32> to vector<8x32xf32>
    %11 = arith.subf %1, %10 : vector<8x32xf32>
    %12 = arith.mulf %11, %11 : vector<8x32xf32>
    %cst_7 = arith.constant dense<0.000000e+00> : vector<8xf32>
    %13 = vector.multi_reduction <add>, %12, %cst_7 [1] : vector<8x32xf32> to vector<8xf32>
    %14 = vector.shape_cast %13 : vector<8xf32> to vector<8x1xf32>
    %cst_8 = arith.constant 3.200000e+01 : f32
    %15 = vector.broadcast %cst_8 : f32 to vector<8x1xf32>
    %16 = arith.divf %14, %15 : vector<8x1xf32>
    %17 = vector.broadcast %9 : vector<8x1xf32> to vector<8x32xf32>
    %18 = arith.subf %1, %17 : vector<8x32xf32>
    %cst_9 = arith.constant 9.99999974E-6 : f32
    %19 = vector.broadcast %cst_9 : f32 to vector<8x1xf32>
    %20 = arith.addf %16, %19 : vector<8x1xf32>
    %21 = math.rsqrt %20 : vector<8x1xf32>
    %22 = vector.broadcast %21 : vector<8x1xf32> to vector<8x32xf32>
    %23 = arith.mulf %18, %22 : vector<8x32xf32>
    %24 = vector.shape_cast %3 : vector<32xf32> to vector<1x32xf32>
    %25 = vector.broadcast %24 : vector<1x32xf32> to vector<8x32xf32>
    %26 = arith.mulf %23, %25 : vector<8x32xf32>
    %27 = vector.shape_cast %5 : vector<32xf32> to vector<1x32xf32>
    %28 = vector.broadcast %27 : vector<1x32xf32> to vector<8x32xf32>
    %29 = arith.addf %26, %28 : vector<8x32xf32>
    %30 = arith.truncf %29 : vector<8x32xf32> to vector<8x32xbf16>
    %31 = vector.shape_cast %30 : vector<8x32xbf16> to vector<1x8x32xbf16>
    %32 = vector.broadcast %31 : vector<1x8x32xbf16> to vector<4x8x32xbf16>
    %c0_10 = arith.constant 0 : index
    %c0_11 = arith.constant 0 : index
    %c0_12 = arith.constant 0 : index
    %33 = vector.load %arg4[%c0_10, %c0_11, %c0_12] : memref<4x32x8xbf16, #tpu.memory_space<vmem>>, vector<4x32x8xbf16>
    "tpu.trace_start"() <{level = 10 : i32, message = "hsd,hde->hse"}> : () -> ()
    %cst_13 = arith.constant dense<0.000000e+00> : vector<4x8x8xf32>
    %34 = tpu.matmul %32, %33, %cst_13 {dimension_numbers = #tpu.dot_dimension_numbers<[2], [1], [1], [2], [0, 0, 0, 1, 1, 2], [0], [0]>} : vector<4x8x32xbf16>, vector<4x32x8xbf16>, vector<4x8x8xf32> -> vector<4x8x8xf32>
    "tpu.trace_stop"() : () -> ()
    %c0_14 = arith.constant 0 : index
    %c0_15 = arith.constant 0 : index
    %c0_16 = arith.constant 0 : index
    %35 = vector.load %arg5[%c0_14, %c0_15, %c0_16] : memref<4x1x8xf32, #tpu.memory_space<vmem>>, vector<4x1x8xf32>
    %36 = vector.broadcast %35 : vector<4x1x8xf32> to vector<4x8x8xf32>
    %37 = arith.addf %34, %36 : vector<4x8x8xf32>
    %c0_17 = arith.constant 0 : index
    %c0_18 = arith.constant 0 : index
    %c0_19 = arith.constant 0 : index
    %38 = vector.load %arg6[%c0_17, %c0_18, %c0_19] : memref<4x32x8xbf16, #tpu.memory_space<vmem>>, vector<4x32x8xbf16>
    "tpu.trace_start"() <{level = 10 : i32, message = "hsd,hde->hse"}> : () -> ()
    %cst_20 = arith.constant dense<0.000000e+00> : vector<4x8x8xf32>
    %39 = tpu.matmul %32, %38, %cst_20 {dimension_numbers = #tpu.dot_dimension_numbers<[2], [1], [1], [2], [0, 0, 0, 1, 1, 2], [0], [0]>} : vector<4x8x32xbf16>, vector<4x32x8xbf16>, vector<4x8x8xf32> -> vector<4x8x8xf32>
    "tpu.trace_stop"() : () -> ()
    %c0_21 = arith.constant 0 : index
    %c0_22 = arith.constant 0 : index
    %c0_23 = arith.constant 0 : index
    %40 = vector.load %arg7[%c0_21, %c0_22, %c0_23] : memref<4x1x8xf32, #tpu.memory_space<vmem>>, vector<4x1x8xf32>
    %41 = vector.broadcast %40 : vector<4x1x8xf32> to vector<4x8x8xf32>
    %42 = arith.addf %39, %41 : vector<4x8x8xf32>
    %c0_24 = arith.constant 0 : index
    %c0_25 = arith.constant 0 : index
    %c0_26 = arith.constant 0 : index
    %43 = vector.load %arg8[%c0_24, %c0_25, %c0_26] : memref<4x32x8xbf16, #tpu.memory_space<vmem>>, vector<4x32x8xbf16>
    "tpu.trace_start"() <{level = 10 : i32, message = "hsd,hde->hse"}> : () -> ()
    %cst_27 = arith.constant dense<0.000000e+00> : vector<4x8x8xf32>
    %44 = tpu.matmul %32, %43, %cst_27 {dimension_numbers = #tpu.dot_dimension_numbers<[2], [1], [1], [2], [0, 0, 0, 1, 1, 2], [0], [0]>} : vector<4x8x32xbf16>, vector<4x32x8xbf16>, vector<4x8x8xf32> -> vector<4x8x8xf32>
    "tpu.trace_stop"() : () -> ()
    %c0_28 = arith.constant 0 : index
    %c0_29 = arith.constant 0 : index
    %c0_30 = arith.constant 0 : index
    %45 = vector.load %arg9[%c0_28, %c0_29, %c0_30] : memref<4x1x8xf32, #tpu.memory_space<vmem>>, vector<4x1x8xf32>
    %46 = vector.broadcast %45 : vector<4x1x8xf32> to vector<4x8x8xf32>
    %47 = arith.addf %44, %46 : vector<4x8x8xf32>
    %48 = arith.truncf %37 : vector<4x8x8xf32> to vector<4x8x8xbf16>
    %49 = arith.truncf %42 : vector<4x8x8xf32> to vector<4x8x8xbf16>
    "tpu.trace_start"() <{level = 10 : i32, message = "hqd,hkd->hqk"}> : () -> ()
    %cst_31 = arith.constant dense<0.000000e+00> : vector<4x8x8xf32>
    %50 = tpu.matmul %48, %49, %cst_31 {dimension_numbers = #tpu.dot_dimension_numbers<[2], [2], [1], [1], [0, 0, 0, 1, 1, 1], [0], [0]>} : vector<4x8x8xbf16>, vector<4x8x8xbf16>, vector<4x8x8xf32> -> vector<4x8x8xf32>
    "tpu.trace_stop"() : () -> ()
    %51 = tpu.iota {dimensions = array<i32: 1>} : vector<1x8x8xi32>
    %52 = tpu.iota {dimensions = array<i32: 2>} : vector<1x8x8xi32>
    %53 = arith.cmpi sgt, %52, %51 : vector<1x8x8xi32>
    %cst_32 = arith.constant 0xFF800000 : f32
    %54 = vector.shape_cast %53 : vector<1x8x8xi1> to vector<1x8x8xi1>
    %55 = vector.broadcast %54 : vector<1x8x8xi1> to vector<4x8x8xi1>
    %56 = vector.broadcast %cst_32 : f32 to vector<4x8x8xf32>
    %57 = arith.select %55, %56, %50 : vector<4x8x8xi1>, vector<4x8x8xf32>
    %cst_33 = arith.constant dense<0xFF800000> : vector<4x8xf32>
    %58 = vector.multi_reduction <maximumf>, %57, %cst_33 [2] : vector<4x8x8xf32> to vector<4x8xf32>
    %59 = vector.shape_cast %58 : vector<4x8xf32> to vector<4x8x1xf32>
    %60 = vector.broadcast %59 : vector<4x8x1xf32> to vector<4x8x8xf32>
    %61 = arith.subf %57, %60 : vector<4x8x8xf32>
    %62 = math.exp %61 : vector<4x8x8xf32>
    %cst_34 = arith.constant dense<0.000000e+00> : vector<4x8xf32>
    %63 = vector.multi_reduction <add>, %62, %cst_34 [2] : vector<4x8x8xf32> to vector<4x8xf32>
    %64 = vector.shape_cast %63 : vector<4x8xf32> to vector<4x8x1xf32>
    %65 = tpu.reciprocal %64 {approx = true} : vector<4x8x1xf32> -> vector<4x8x1xf32>
    %66 = vector.broadcast %65 : vector<4x8x1xf32> to vector<4x8x8xf32>
    %67 = arith.mulf %62, %66 : vector<4x8x8xf32>
    %68 = arith.truncf %67 : vector<4x8x8xf32> to vector<4x8x8xbf16>
    %69 = arith.truncf %47 : vector<4x8x8xf32> to vector<4x8x8xbf16>
    "tpu.trace_start"() <{level = 10 : i32, message = "hqk,hkd->hqd"}> : () -> ()
    %cst_35 = arith.constant dense<0.000000e+00> : vector<4x8x8xf32>
    %70 = tpu.matmul %68, %69, %cst_35 {dimension_numbers = #tpu.dot_dimension_numbers<[2], [1], [1], [2], [0, 0, 0, 1, 1, 2], [0], [0]>} : vector<4x8x8xbf16>, vector<4x8x8xbf16>, vector<4x8x8xf32> -> vector<4x8x8xf32>
    "tpu.trace_stop"() : () -> ()
    %71 = arith.truncf %70 : vector<4x8x8xf32> to vector<4x8x8xbf16>
    %c0_36 = arith.constant 0 : index
    %c0_37 = arith.constant 0 : index
    %c0_38 = arith.constant 0 : index
    %72 = vector.load %arg10[%c0_36, %c0_37, %c0_38] : memref<4x8x32xbf16, #tpu.memory_space<vmem>>, vector<4x8x32xbf16>
    "tpu.trace_start"() <{level = 10 : i32, message = "hqd,hde->hqe"}> : () -> ()
    %cst_39 = arith.constant dense<0.000000e+00> : vector<4x8x32xf32>
    %73 = tpu.matmul %71, %72, %cst_39 {dimension_numbers = #tpu.dot_dimension_numbers<[2], [1], [1], [2], [0, 0, 0, 1, 1, 2], [0], [0]>} : vector<4x8x8xbf16>, vector<4x8x32xbf16>, vector<4x8x32xf32> -> vector<4x8x32xf32>
    "tpu.trace_stop"() : () -> ()
    %cst_40 = arith.constant dense<0.000000e+00> : vector<8x32xf32>
    %74 = vector.multi_reduction <add>, %73, %cst_40 [0] : vector<4x8x32xf32> to vector<8x32xf32>
    %c0_41 = arith.constant 0 : index
    %c0_42 = arith.constant 0 : index
    %75 = vector.load %arg11[%c0_41, %c0_42] : memref<1x32xf32, #tpu.memory_space<vmem>>, vector<1x32xf32>
    %76 = vector.shape_cast %75 : vector<1x32xf32> to vector<32xf32>
    %77 = vector.shape_cast %76 : vector<32xf32> to vector<1x32xf32>
    %78 = vector.broadcast %77 : vector<1x32xf32> to vector<8x32xf32>
    %79 = arith.addf %74, %78 : vector<8x32xf32>
    %80 = arith.addf %79, %1 : vector<8x32xf32>
    %c0_43 = arith.constant 0 : index
    %c0_44 = arith.constant 0 : index
    %81 = vector.load %arg12[%c0_43, %c0_44] : memref<1x32xf32, #tpu.memory_space<vmem>>, vector<1x32xf32>
    %82 = vector.shape_cast %81 : vector<1x32xf32> to vector<32xf32>
    %c0_45 = arith.constant 0 : index
    %c0_46 = arith.constant 0 : index
    %83 = vector.load %arg13[%c0_45, %c0_46] : memref<1x32xf32, #tpu.memory_space<vmem>>, vector<1x32xf32>
    %84 = vector.shape_cast %83 : vector<1x32xf32> to vector<32xf32>
    %cst_47 = arith.constant dense<0.000000e+00> : vector<8xf32>
    %85 = vector.multi_reduction <add>, %80, %cst_47 [1] : vector<8x32xf32> to vector<8xf32>
    %86 = vector.shape_cast %85 : vector<8xf32> to vector<8x1xf32>
    %cst_48 = arith.constant 3.200000e+01 : f32
    %87 = vector.broadcast %cst_48 : f32 to vector<8x1xf32>
    %88 = arith.divf %86, %87 : vector<8x1xf32>
    %89 = vector.broadcast %88 : vector<8x1xf32> to vector<8x32xf32>
    %90 = arith.subf %80, %89 : vector<8x32xf32>
    %91 = arith.mulf %90, %90 : vector<8x32xf32>
    %cst_49 = arith.constant dense<0.000000e+00> : vector<8xf32>
    %92 = vector.multi_reduction <add>, %91, %cst_49 [1] : vector<8x32xf32> to vector<8xf32>
    %93 = vector.shape_cast %92 : vector<8xf32> to vector<8x1xf32>
    %cst_50 = arith.constant 3.200000e+01 : f32
    %94 = vector.broadcast %cst_50 : f32 to vector<8x1xf32>
    %95 = arith.divf %93, %94 : vector<8x1xf32>
    %96 = vector.broadcast %88 : vector<8x1xf32> to vector<8x32xf32>
    %97 = arith.subf %80, %96 : vector<8x32xf32>
    %cst_51 = arith.constant 9.99999974E-6 : f32
    %98 = vector.broadcast %cst_51 : f32 to vector<8x1xf32>
    %99 = arith.addf %95, %98 : vector<8x1xf32>
    %100 = math.rsqrt %99 : vector<8x1xf32>
    %101 = vector.broadcast %100 : vector<8x1xf32> to vector<8x32xf32>
    %102 = arith.mulf %97, %101 : vector<8x32xf32>
    %103 = vector.shape_cast %82 : vector<32xf32> to vector<1x32xf32>
    %104 = vector.broadcast %103 : vector<1x32xf32> to vector<8x32xf32>
    %105 = arith.mulf %102, %104 : vector<8x32xf32>
    %106 = vector.shape_cast %84 : vector<32xf32> to vector<1x32xf32>
    %107 = vector.broadcast %106 : vector<1x32xf32> to vector<8x32xf32>
    %108 = arith.addf %105, %107 : vector<8x32xf32>
    %109 = arith.truncf %108 : vector<8x32xf32> to vector<8x32xbf16>
    %c0_52 = arith.constant 0 : index
    %c0_53 = arith.constant 0 : index
    %110 = vector.load %arg14[%c0_52, %c0_53] : memref<32x128xbf16, #tpu.memory_space<vmem>>, vector<32x128xbf16>
    %cst_54 = arith.constant dense<0.000000e+00> : vector<8x128xf32>
    %111 = tpu.matmul %109, %110, %cst_54 {dimension_numbers = #tpu.dot_dimension_numbers<[1], [0], [0], [1], [0, 0, 1, 1], [], []>} : vector<8x32xbf16>, vector<32x128xbf16>, vector<8x128xf32> -> vector<8x128xf32>
    %c0_55 = arith.constant 0 : index
    %c0_56 = arith.constant 0 : index
    %112 = vector.load %arg15[%c0_55, %c0_56] : memref<1x128xf32, #tpu.memory_space<vmem>>, vector<1x128xf32>
    %113 = vector.shape_cast %112 : vector<1x128xf32> to vector<128xf32>
    %114 = vector.shape_cast %113 : vector<128xf32> to vector<1x128xf32>
    %115 = vector.broadcast %114 : vector<1x128xf32> to vector<8x128xf32>
    %116 = arith.addf %111, %115 : vector<8x128xf32>
    %cst_57 = arith.constant 1.702000e+00 : f32
    %117 = vector.broadcast %cst_57 : f32 to vector<8x128xf32>
    %118 = arith.mulf %117, %116 : vector<8x128xf32>
    %119 = arith.negf %118 : vector<8x128xf32>
    %120 = math.exp %119 : vector<8x128xf32>
    %cst_58 = arith.constant 1.000000e+00 : f32
    %121 = vector.broadcast %cst_58 : f32 to vector<8x128xf32>
    %122 = arith.addf %121, %120 : vector<8x128xf32>
    %123 = arith.divf %121, %122 : vector<8x128xf32>
    %124 = arith.mulf %116, %123 : vector<8x128xf32>
    %125 = arith.truncf %124 : vector<8x128xf32> to vector<8x128xbf16>
    %c0_59 = arith.constant 0 : index
    %c0_60 = arith.constant 0 : index
    %126 = vector.load %arg16[%c0_59, %c0_60] : memref<128x32xbf16, #tpu.memory_space<vmem>>, vector<128x32xbf16>
    %cst_61 = arith.constant dense<0.000000e+00> : vector<8x32xf32>
    %127 = tpu.matmul %125, %126, %cst_61 {dimension_numbers = #tpu.dot_dimension_numbers<[1], [0], [0], [1], [0, 0, 1, 1], [], []>} : vector<8x128xbf16>, vector<128x32xbf16>, vector<8x32xf32> -> vector<8x32xf32>
    %c0_62 = arith.constant 0 : index
    %c0_63 = arith.constant 0 : index
    %128 = vector.load %arg17[%c0_62, %c0_63] : memref<1x32xf32, #tpu.memory_space<vmem>>, vector<1x32xf32>
    %129 = vector.shape_cast %128 : vector<1x32xf32> to vector<32xf32>
    %130 = vector.shape_cast %129 : vector<32xf32> to vector<1x32xf32>
    %131 = vector.broadcast %130 : vector<1x32xf32> to vector<8x32xf32>
    %132 = arith.addf %127, %131 : vector<8x32xf32>
    %133 = arith.addf %132, %80 : vector<8x32xf32>
    %c0_64 = arith.constant 0 : index
    %c0_65 = arith.constant 0 : index
    %c0_66 = arith.constant 0 : index
    %134 = vector.load %arg18[%c0_64, %c0_65, %c0_66] : memref<1x8x32xf32, #tpu.memory_space<vmem>>, vector<1x8x32xf32>
    %135 = vector.shape_cast %134 : vector<1x8x32xf32> to vector<8x32xf32>
    %136 = vector.shape_cast %133 : vector<8x32xf32> to vector<1x8x32xf32>
    tpu.vector_store %arg18[%c0_64, %c0_65, %c0_66], %136 {strides = array<i32>} : memref<1x8x32xf32, #tpu.memory_space<vmem>>, vector<1x8x32xf32>,
    return
  }
  func.func @transform_0(%arg0: i32) -> (i32, i32, i32) {
    %c0_i32 = arith.constant 0 : i32
    %c0_i32_0 = arith.constant 0 : i32
    %c0_i32_1 = arith.constant 0 : i32
    return %arg0, %c0_i32, %c0_i32_0 : i32, i32, i32
  }
  func.func @transform_1(%arg0: i32) -> (i32, i32) {
    %c0_i32 = arith.constant 0 : i32
    %c0_i32_0 = arith.constant 0 : i32
    %c0_i32_1 = arith.constant 0 : i32
    return %c0_i32, %c0_i32_0 : i32, i32
  }
  func.func @transform_2(%arg0: i32) -> (i32, i32) {
    %c0_i32 = arith.constant 0 : i32
    %c0_i32_0 = arith.constant 0 : i32
    %c0_i32_1 = arith.constant 0 : i32
    return %c0_i32, %c0_i32_0 : i32, i32
  }
  func.func @transform_3(%arg0: i32) -> (i32, i32, i32) {
    %c0_i32 = arith.constant 0 : i32
    %c0_i32_0 = arith.constant 0 : i32
    %c0_i32_1 = arith.constant 0 : i32
    %c0_i32_2 = arith.constant 0 : i32
    return %c0_i32, %c0_i32_0, %c0_i32_1 : i32, i32, i32
  }
  func.func @transform_4(%arg0: i32) -> (i32, i32, i32) {
    %c0_i32 = arith.constant 0 : i32
    %c0_i32_0 = arith.constant 0 : i32
    %c0_i32_1 = arith.constant 0 : i32
    %c0_i32_2 = arith.constant 0 : i32
    return %c0_i32, %c0_i32_0, %c0_i32_1 : i32, i32, i32
  }
  func.func @transform_5(%arg0: i32) -> (i32, i32, i32) {
    %c0_i32 = arith.constant 0 : i32
    %c0_i32_0 = arith.constant 0 : i32
    %c0_i32_1 = arith.constant 0 : i32
    %c0_i32_2 = arith.constant 0 : i32
    return %c0_i32, %c0_i32_0, %c0_i32_1 : i32, i32, i32
  }
  func.func @transform_6(%arg0: i32) -> (i32, i32, i32) {
    %c0_i32 = arith.constant 0 : i32
    %c0_i32_0 = arith.constant 0 : i32
    %c0_i32_1 = arith.constant 0 : i32
    %c0_i32_2 = arith.constant 0 : i32
    return %c0_i32, %c0_i32_0, %c0_i32_1 : i32, i32, i32
  }
  func.func @transform_7(%arg0: i32) -> (i32, i32, i32) {
    %c0_i32 = arith.constant 0 : i32
    %c0_i32_0 = arith.constant 0 : i32
    %c0_i32_1 = arith.constant 0 : i32
    %c0_i32_2 = arith.constant 0 : i32
    return %c0_i32, %c0_i32_0, %c0_i32_1 : i32, i32, i32
  }
  func.func @transform_8(%arg0: i32) -> (i32, i32, i32) {
    %c0_i32 = arith.constant 0 : i32
    %c0_i32_0 = arith.constant 0 : i32
    %c0_i32_1 = arith.constant 0 : i32
    %c0_i32_2 = arith.constant 0 : i32
    return %c0_i32, %c0_i32_0, %c0_i32_1 : i32, i32, i32
  }
  func.func @transform_9(%arg0: i32) -> (i32, i32, i32) {
    %c0_i32 = arith.constant 0 : i32
    %c0_i32_0 = arith.constant 0 : i32
    %c0_i32_1 = arith.constant 0 : i32
    %c0_i32_2 = arith.constant 0 : i32
    return %c0_i32, %c0_i32_0, %c0_i32_1 : i32, i32, i32
  }
  func.func @transform_10(%arg0: i32) -> (i32, i32) {
    %c0_i32 = arith.constant 0 : i32
    %c0_i32_0 = arith.constant 0 : i32
    %c0_i32_1 = arith.constant 0 : i32
    return %c0_i32, %c0_i32_0 : i32, i32
  }
  func.func @transform_11(%arg0: i32) -> (i32, i32) {
    %c0_i32 = arith.constant 0 : i32
    %c0_i32_0 = arith.constant 0 : i32
    %c0_i32_1 = arith.constant 0 : i32
    return %c0_i32, %c0_i32_0 : i32, i32
  }
  func.func @transform_12(%arg0: i32) -> (i32, i32) {
    %c0_i32 = arith.constant 0 : i32
    %c0_i32_0 = arith.constant 0 : i32
    %c0_i32_1 = arith.constant 0 : i32
    return %c0_i32, %c0_i32_0 : i32, i32
  }
  func.func @transform_13(%arg0: i32) -> (i32, i32) {
    %c0_i32 = arith.constant 0 : i32
    %c0_i32_0 = arith.constant 0 : i32
    %c0_i32_1 = arith.constant 0 : i32
    return %c0_i32, %c0_i32_0 : i32, i32
  }
  func.func @transform_14(%arg0: i32) -> (i32, i32) {
    %c0_i32 = arith.constant 0 : i32
    %c0_i32_0 = arith.constant 0 : i32
    %c0_i32_1 = arith.constant 0 : i32
    return %c0_i32, %c0_i32_0 : i32, i32
  }
  func.func @transform_15(%arg0: i32) -> (i32, i32) {
    %c0_i32 = arith.constant 0 : i32
    %c0_i32_0 = arith.constant 0 : i32
    %c0_i32_1 = arith.constant 0 : i32
    return %c0_i32, %c0_i32_0 : i32, i32
  }
  func.func @transform_16(%arg0: i32) -> (i32, i32) {
    %c0_i32 = arith.constant 0 : i32
    %c0_i32_0 = arith.constant 0 : i32
    %c0_i32_1 = arith.constant 0 : i32
    return %c0_i32, %c0_i32_0 : i32, i32
  }
  func.func @transform_17(%arg0: i32) -> (i32, i32, i32) {
    %c0_i32 = arith.constant 0 : i32
    %c0_i32_0 = arith.constant 0 : i32
    %c0_i32_1 = arith.constant 0 : i32
    return %arg0, %c0_i32, %c0_i32_0 : i32, i32, i32
  }
}

module attributes {stable_mosaic.version = 11 : i64} {
  func.func @_clip_layer_kernel(%arg0: i32, %arg1: memref<1x8x32xf32, #tpu.memory_space<vmem>>, %arg2: memref<1x32xf32, #tpu.memory_space<vmem>>, %arg3: memref<1x32xf32, #tpu.memory_space<vmem>>, %arg4: memref<4x32x8xbf16, #tpu.memory_space<vmem>>, %arg5: memref<4x1x8xf32, #tpu.memory_space<vmem>>, %arg6: memref<4x32x8xbf16, #tpu.memory_space<vmem>>, %arg7: memref<4x1x8xf32, #tpu.memory_space<vmem>>, %arg8: memref<4x32x8xbf16, #tpu.memory_space<vmem>>, %arg9: memref<4x1x8xf32, #tpu.memory_space<vmem>>, %arg10: memref<4x8x32xbf16, #tpu.memory_space<vmem>>, %arg11: memref<1x32xf32, #tpu.memory_space<vmem>>, %arg12: memref<1x32xf32, #tpu.memory_space<vmem>>, %arg13: memref<1x32xf32, #tpu.memory_space<vmem>>, %arg14: memref<32x128xbf16, #tpu.memory_space<vmem>>, %arg15: memref<1x128xf32, #tpu.memory_space<vmem>>, %arg16: memref<128x32xbf16, #tpu.memory_space<vmem>>, %arg17: memref<1x32xf32, #tpu.memory_space<vmem>>, %arg18: memref<1x8x32xf32, #tpu.memory_space<vmem>>) attributes {dimension_semantics = [#tpu.dimension_semantics<parallel>], iteration_bounds = array<i64: 2>, scalar_prefetch = 0 : i64, scratch_operands = 0 : i64, tpu.core_type = #tpu.core_type<tc>, window_params = [{transform_indices = @transform_0, window_bounds = array<i64: 1, 8, 32>}, {pipeline_mode = #tpu.pipeline_mode<synchronous>, transform_indices = @transform_1, window_bounds = array<i64: 1, 32>}, {pipeline_mode = #tpu.pipeline_mode<synchronous>, transform_indices = @transform_2, window_bounds = array<i64: 1, 32>}, {pipeline_mode = #tpu.pipeline_mode<synchronous>, transform_indices = @transform_3, window_bounds = array<i64: 4, 32, 8>}, {pipeline_mode = #tpu.pipeline_mode<synchronous>, transform_indices = @transform_4, window_bounds = array<i64: 4, 1, 8>}, {pipeline_mode = #tpu.pipeline_mode<synchronous>, transform_indices = @transform_5, window_bounds = array<i64: 4, 32, 8>}, {pipeline_mode = #tpu.pipeline_mode<synchronous>, transform_indices = @transform_6, window_bounds = array<i64: 4, 1, 8>}, {pipeline_mode = #tpu.pipeline_mode<synchronous>, transform_indices = @transform_7, window_bounds = array<i64: 4, 32, 8>}, {pipeline_mode = #tpu.pipeline_mode<synchronous>, transform_indices = @transform_8, window_bounds = array<i64: 4, 1, 8>}, {pipeline_mode = #tpu.pipeline_mode<synchronous>, transform_indices = @transform_9, window_bounds = array<i64: 4, 8, 32>}, {pipeline_mode = #tpu.pipeline_mode<synchronous>, transform_indices = @transform_10, window_bounds = array<i64: 1, 32>}, {pipeline_mode = #tpu.pipeline_mode<synchronous>, transform_indices = @transform_11, window_bounds = array<i64: 1, 32>}, {pipeline_mode = #tpu.pipeline_mode<synchronous>, transform_indices = @transform_12, window_bounds = array<i64: 1, 32>}, {pipeline_mode = #tpu.pipeline_mode<synchronous>, transform_indices = @transform_13, window_bounds = array<i64: 32, 128>}, {pipeline_mode = #tpu.pipeline_mode<synchronous>, transform_indices = @transform_14, window_bounds = array<i64: 1, 128>}, {pipeline_mode = #tpu.pipeline_mode<synchronous>, transform_indices = @transform_15, window_bounds = array<i64: 128, 32>}, {pipeline_mode = #tpu.pipeline_mode<synchronous>, transform_indices = @transform_16, window_bounds = array<i64: 1, 32>}, {transform_indices = @transform_17, window_bounds = array<i64: 1, 8, 32>}]} {
    %c0 = arith.constant 0 : index
    %c0_0 = arith.constant 0 : index
    %c0_1 = arith.constant 0 : index
    %0 = vector.load %arg1[%c0, %c0_0, %c0_1] : memref<1x8x32xf32, #tpu.memory_space<vmem>>, vector<1x8x32xf32>
    %1 = vector.shape_cast %0 : vector<1x8x32xf32> to vector<8x32xf32>
    %c0_2 = arith.constant 0 : index
    %c0_3 = arith.constant 0 : index
    %2 = vector.load %arg2[%c0_2, %c0_3] : memref<1x32xf32, #tpu.memory_space<vmem>>, vector<1x32xf32>
    %3 = vector.shape_cast %2 : vector<1x32xf32> to vector<32xf32>
    %c0_4 = arith.constant 0 : index
    %c0_5 = arith.constant 0 : index
    %4 = vector.load %arg3[%c0_4, %c0_5] : memref<1x32xf32, #tpu.memory_space<vmem>>, vector<1x32xf32>
    %5 = vector.shape_cast %4 : vector<1x32xf32> to vector<32xf32>
    %cst = arith.constant dense<0.000000e+00> : vector<8xf32>
    %6 = vector.multi_reduction <add>, %1, %cst [1] : vector<8x32xf32> to vector<8xf32>
    %7 = vector.shape_cast %6 : vector<8xf32> to vector<8x1xf32>
    %cst_6 = arith.constant 3.200000e+01 : f32
    %8 = vector.broadcast %cst_6 : f32 to vector<8x1xf32>
    %9 = arith.divf %7, %8 : vector<8x1xf32>
    %10 = vector.broadcast %9 : vector<8x1xf32> to vector<8x32xf32>
    %11 = arith.subf %1, %10 : vector<8x32xf32>
    %12 = arith.mulf %11, %11 : vector<8x32xf32>
    %cst_7 = arith.constant dense<0.000000e+00> : vector<8xf32>
    %13 = vector.multi_reduction <add>, %12, %cst_7 [1] : vector<8x32xf32> to vector<8xf32>
    %14 = vector.shape_cast %13 : vector<8xf32> to vector<8x1xf32>
    %cst_8 = arith.constant 3.200000e+01 : f32
    %15 = vector.broadcast %cst_8 : f32 to vector<8x1xf32>
    %16 = arith.divf %14, %15 : vector<8x1xf32>
    %17 = vector.broadcast %9 : vector<8x1xf32> to vector<8x32xf32>
    %18 = arith.subf %1, %17 : vector<8x32xf32>
    %cst_9 = arith.constant 9.99999974E-6 : f32
    %19 = vector.broadcast %cst_9 : f32 to vector<8x1xf32>
    %20 = arith.addf %16, %19 : vector<8x1xf32>
    %21 = math.rsqrt %20 : vector<8x1xf32>
    %22 = vector.broadcast %21 : vector<8x1xf32> to vector<8x32xf32>
    %23 = arith.mulf %18, %22 : vector<8x32xf32>
    %24 = vector.shape_cast %3 : vector<32xf32> to vector<1x32xf32>
    %25 = vector.broadcast %24 : vector<1x32xf32> to vector<8x32xf32>
    %26 = arith.mulf %23, %25 : vector<8x32xf32>
    %27 = vector.shape_cast %5 : vector<32xf32> to vector<1x32xf32>
    %28 = vector.broadcast %27 : vector<1x32xf32> to vector<8x32xf32>
    %29 = arith.addf %26, %28 : vector<8x32xf32>
    %30 = arith.truncf %29 : vector<8x32xf32> to vector<8x32xbf16>
    %31 = vector.shape_cast %30 : vector<8x32xbf16> to vector<1x8x32xbf16>
    %32 = vector.broadcast %31 : vector<1x8x32xbf16> to vector<4x8x32xbf16>
    %c0_10 = arith.constant 0 : index
    %c0_11 = arith.constant 0 : index
    %c0_12 = arith.constant 0 : index
    %33 = vector.load %arg4[%c0_10, %c0_11, %c0_12] : memref<4x32x8xbf16, #tpu.memory_space<vmem>>, vector<4x32x8xbf16>
    "tpu.trace_start"() <{level = 10 : i32, message = "hsd,hde->hse"}> : () -> ()
    %cst_13 = arith.constant dense<0.000000e+00> : vector<4x8x8xf32>
    %34 = tpu.matmul %32, %33, %cst_13 {dimension_numbers = #tpu.dot_dimension_numbers<[2], [1], [1], [2], [0, 0, 0, 1, 1, 2], [0], [0]>} : vector<4x8x32xbf16>, vector<4x32x8xbf16>, vector<4x8x8xf32> -> vector<4x8x8xf32>
    "tpu.trace_stop"() : () -> ()
    %c0_14 = arith.constant 0 : index
    %c0_15 = arith.constant 0 : index
    %c0_16 = arith.constant 0 : index
    %35 = vector.load %arg5[%c0_14, %c0_15, %c0_16] : memref<4x1x8xf32, #tpu.memory_space<vmem>>, vector<4x1x8xf32>
    %36 = vector.broadcast %35 : vector<4x1x8xf32> to vector<4x8x8xf32>
    %37 = arith.addf %34, %36 : vector<4x8x8xf32>
    %c0_17 = arith.constant 0 : index
    %c0_18 = arith.constant 0 : index
    %c0_19 = arith.constant 0 : index
    %38 = vector.load %arg6[%c0_17, %c0_18, %c0_19] : memref<4x32x8xbf16, #tpu.memory_space<vmem>>, vector<4x32x8xbf16>
    "tpu.trace_start"() <{level = 10 : i32, message = "hsd,hde->hse"}> : () -> ()
    %cst_20 = arith.constant dense<0.000000e+00> : vector<4x8x8xf32>
    %39 = tpu.matmul %32, %38, %cst_20 {dimension_numbers = #tpu.dot_dimension_numbers<[2], [1], [1], [2], [0, 0, 0, 1, 1, 2], [0], [0]>} : vector<4x8x32xbf16>, vector<4x32x8xbf16>, vector<4x8x8xf32> -> vector<4x8x8xf32>
    "tpu.trace_stop"() : () -> ()
    %c0_21 = arith.constant 0 : index
    %c0_22 = arith.constant 0 : index
    %c0_23 = arith.constant 0 : index
    %40 = vector.load %arg7[%c0_21, %c0_22, %c0_23] : memref<4x1x8xf32, #tpu.memory_space<vmem>>, vector<4x1x8xf32>
    %41 = vector.broadcast %40 : vector<4x1x8xf32> to vector<4x8x8xf32>
    %42 = arith.addf %39, %41 : vector<4x8x8xf32>
    %c0_24 = arith.constant 0 : index
    %c0_25 = arith.constant 0 : index
    %c0_26 = arith.constant 0 : index
    %43 = vector.load %arg8[%c0_24, %c0_25, %c0_26] : memref<4x32x8xbf16, #tpu.memory_space<vmem>>, vector<4x32x8xbf16>
    "tpu.trace_start"() <{level = 10 : i32, message = "hsd,hde->hse"}> : () -> ()
    %cst_27 = arith.constant dense<0.000000e+00> : vector<4x8x8xf32>
    %44 = tpu.matmul %32, %43, %cst_27 {dimension_numbers = #tpu.dot_dimension_numbers<[2], [1], [1], [2], [0, 0, 0, 1, 1, 2], [0], [0]>} : vector<4x8x32xbf16>, vector<4x32x8xbf16>, vector<4x8x8xf32> -> vector<4x8x8xf32>
    "tpu.trace_stop"() : () -> ()
    %c0_28 = arith.constant 0 : index
    %c0_29 = arith.constant 0 : index
    %c0_30 = arith.constant 0 : index
    %45 = vector.load %arg9[%c0_28, %c0_29, %c0_30] : memref<4x1x8xf32, #tpu.memory_space<vmem>>, vector<4x1x8xf32>
    %46 = vector.broadcast %45 : vector<4x1x8xf32> to vector<4x8x8xf32>
    %47 = arith.addf %44, %46 : vector<4x8x8xf32>
    %48 = arith.truncf %37 : vector<4x8x8xf32> to vector<4x8x8xbf16>
    %49 = arith.truncf %42 : vector<4x8x8xf32> to vector<4x8x8xbf16>
    "tpu.trace_start"() <{level = 10 : i32, message = "hqd,hkd->hqk"}> : () -> ()
    %cst_31 = arith.constant dense<0.000000e+00> : vector<4x8x8xf32>
    %50 = tpu.matmul %48, %49, %cst_31 {dimension_numbers = #tpu.dot_dimension_numbers<[2], [2], [1], [1], [0, 0, 0, 1, 1, 1], [0], [0]>} : vector<4x8x8xbf16>, vector<4x8x8xbf16>, vector<4x8x8xf32> -> vector<4x8x8xf32>
    "tpu.trace_stop"() : () -> ()
    %51 = tpu.iota {dimensions = array<i32: 1>} : vector<1x8x8xi32>
    %52 = tpu.iota {dimensions = array<i32: 2>} : vector<1x8x8xi32>
    %53 = arith.cmpi sgt, %52, %51 : vector<1x8x8xi32>
    %cst_32 = arith.constant 0xFF800000 : f32
    %54 = vector.shape_cast %53 : vector<1x8x8xi1> to vector<1x8x8xi1>
    %55 = vector.broadcast %54 : vector<1x8x8xi1> to vector<4x8x8xi1>
    %56 = vector.broadcast %cst_32 : f32 to vector<4x8x8xf32>
    %57 = arith.select %55, %56, %50 : vector<4x8x8xi1>, vector<4x8x8xf32>
    %cst_33 = arith.constant dense<0xFF800000> : vector<4x8xf32>
    %58 = vector.multi_reduction <maximumf>, %57, %cst_33 [2] : vector<4x8x8xf32> to vector<4x8xf32>
    %59 = vector.shape_cast %58 : vector<4x8xf32> to vector<4x8x1xf32>
    %60 = vector.broadcast %59 : vector<4x8x1xf32> to vector<4x8x8xf32>
    %61 = arith.subf %57, %60 : vector<4x8x8xf32>
    %62 = math.exp %61 : vector<4x8x8xf32>
    %cst_34 = arith.constant dense<0.000000e+00> : vector<4x8xf32>
    %63 = vector.multi_reduction <add>, %62, %cst_34 [2] : vector<4x8x8xf32> to vector<4x8xf32>
    %64 = vector.shape_cast %63 : vector<4x8xf32> to vector<4x8x1xf32>
    %65 = tpu.reciprocal %64 {approx = true} : vector<4x8x1xf32> -> vector<4x8x1xf32>
    %66 = vector.broadcast %65 : vector<4x8x1xf32> to vector<4x8x8xf32>
    %67 = arith.mulf %62, %66 : vector<4x8x8xf32>
    %68 = arith.truncf %67 : vector<4x8x8xf32> to vector<4x8x8xbf16>
    %69 = arith.truncf %47 : vector<4x8x8xf32> to vector<4x8x8xbf16>
    "tpu.trace_start"() <{level = 10 : i32, message = "hqk,hkd->hqd"}> : () -> ()
    %cst_35 = arith.constant dense<0.000000e+00> : vector<4x8x8xf32>
    %70 = tpu.matmul %68, %69, %cst_35 {dimension_numbers = #tpu.dot_dimension_numbers<[2], [1], [1], [2], [0, 0, 0, 1, 1, 2], [0], [0]>} : vector<4x8x8xbf16>, vector<4x8x8xbf16>, vector<4x8x8xf32> -> vector<4x8x8xf32>
    "tpu.trace_stop"() : () -> ()
    %71 = arith.truncf %70 : vector<4x8x8xf32> to vector<4x8x8xbf16>
    %c0_36 = arith.constant 0 : index
    %c0_37 = arith.constant 0 : index
    %c0_38 = arith.constant 0 : index
    %72 = vector.load %arg10[%c0_36, %c0_37, %c0_38] : memref<4x8x32xbf16, #tpu.memory_space<vmem>>, vector<4x8x32xbf16>
    "tpu.trace_start"() <{level = 10 : i32, message = "hqd,hde->hqe"}> : () -> ()
    %cst_39 = arith.constant dense<0.000000e+00> : vector<4x8x32xf32>
    %73 = tpu.matmul %71, %72, %cst_39 {dimension_numbers = #tpu.dot_dimension_numbers<[2], [1], [1], [2], [0, 0, 0, 1, 1, 2], [0], [0]>} : vector<4x8x8xbf16>, vector<4x8x32xbf16>, vector<4x8x32xf32> -> vector<4x8x32xf32>
    "tpu.trace_stop"() : () -> ()
    %cst_40 = arith.constant dense<0.000000e+00> : vector<8x32xf32>
    %74 = vector.multi_reduction <add>, %73, %cst_40 [0] : vector<4x8x32xf32> to vector<8x32xf32>
    %c0_41 = arith.constant 0 : index
    %c0_42 = arith.constant 0 : index
    %75 = vector.load %arg11[%c0_41, %c0_42] : memref<1x32xf32, #tpu.memory_space<vmem>>, vector<1x32xf32>
    %76 = vector.shape_cast %75 : vector<1x32xf32> to vector<32xf32>
    %77 = vector.shape_cast %76 : vector<32xf32> to vector<1x32xf32>
    %78 = vector.broadcast %77 : vector<1x32xf32> to vector<8x32xf32>
    %79 = arith.addf %74, %78 : vector<8x32xf32>
    %80 = arith.addf %79, %1 : vector<8x32xf32>
    %c0_43 = arith.constant 0 : index
    %c0_44 = arith.constant 0 : index
    %81 = vector.load %arg12[%c0_43, %c0_44] : memref<1x32xf32, #tpu.memory_space<vmem>>, vector<1x32xf32>
    %82 = vector.shape_cast %81 : vector<1x32xf32> to vector<32xf32>
    %c0_45 = arith.constant 0 : index
    %c0_46 = arith.constant 0 : index
    %83 = vector.load %arg13[%c0_45, %c0_46] : memref<1x32xf32, #tpu.memory_space<vmem>>, vector<1x32xf32>
    %84 = vector.shape_cast %83 : vector<1x32xf32> to vector<32xf32>
    %cst_47 = arith.constant dense<0.000000e+00> : vector<8xf32>
    %85 = vector.multi_reduction <add>, %80, %cst_47 [1] : vector<8x32xf32> to vector<8xf32>
    %86 = vector.shape_cast %85 : vector<8xf32> to vector<8x1xf32>
    %cst_48 = arith.constant 3.200000e+01 : f32
    %87 = vector.broadcast %cst_48 : f32 to vector<8x1xf32>
    %88 = arith.divf %86, %87 : vector<8x1xf32>
    %89 = vector.broadcast %88 : vector<8x1xf32> to vector<8x32xf32>
    %90 = arith.subf %80, %89 : vector<8x32xf32>
    %91 = arith.mulf %90, %90 : vector<8x32xf32>
    %cst_49 = arith.constant dense<0.000000e+00> : vector<8xf32>
    %92 = vector.multi_reduction <add>, %91, %cst_49 [1] : vector<8x32xf32> to vector<8xf32>
    %93 = vector.shape_cast %92 : vector<8xf32> to vector<8x1xf32>
    %cst_50 = arith.constant 3.200000e+01 : f32
    %94 = vector.broadcast %cst_50 : f32 to vector<8x1xf32>
    %95 = arith.divf %93, %94 : vector<8x1xf32>
    %96 = vector.broadcast %88 : vector<8x1xf32> to vector<8x32xf32>
    %97 = arith.subf %80, %96 : vector<8x32xf32>
    %cst_51 = arith.constant 9.99999974E-6 : f32
    %98 = vector.broadcast %cst_51 : f32 to vector<8x1xf32>
    %99 = arith.addf %95, %98 : vector<8x1xf32>
    %100 = math.rsqrt %99 : vector<8x1xf32>
    %101 = vector.broadcast %100 : vector<8x1xf32> to vector<8x32xf32>
    %102 = arith.mulf %97, %101 : vector<8x32xf32>
    %103 = vector.shape_cast %82 : vector<32xf32> to vector<1x32xf32>
    %104 = vector.broadcast %103 : vector<1x32xf32> to vector<8x32xf32>
    %105 = arith.mulf %102, %104 : vector<8x32xf32>
    %106 = vector.shape_cast %84 : vector<32xf32> to vector<1x32xf32>
    %107 = vector.broadcast %106 : vector<1x32xf32> to vector<8x32xf32>
    %108 = arith.addf %105, %107 : vector<8x32xf32>
    %109 = arith.truncf %108 : vector<8x32xf32> to vector<8x32xbf16>
    %c0_52 = arith.constant 0 : index
    %c0_53 = arith.constant 0 : index
    %110 = vector.load %arg14[%c0_52, %c0_53] : memref<32x128xbf16, #tpu.memory_space<vmem>>, vector<32x128xbf16>
    %cst_54 = arith.constant dense<0.000000e+00> : vector<8x128xf32>
    %111 = tpu.matmul %109, %110, %cst_54 {dimension_numbers = #tpu.dot_dimension_numbers<[1], [0], [0], [1], [0, 0, 1, 1], [], []>} : vector<8x32xbf16>, vector<32x128xbf16>, vector<8x128xf32> -> vector<8x128xf32>
    %c0_55 = arith.constant 0 : index
    %c0_56 = arith.constant 0 : index
    %112 = vector.load %arg15[%c0_55, %c0_56] : memref<1x128xf32, #tpu.memory_space<vmem>>, vector<1x128xf32>
    %113 = vector.shape_cast %112 : vector<1x128xf32> to vector<128xf32>
    %114 = vector.shape_cast %113 : vector<128xf32> to vector<1x128xf32>
    %115 = vector.broadcast %114 : vector<1x128xf32> to vector<8x128xf32>
    %116 = arith.addf %111, %115 : vector<8x128xf32>
    %cst_57 = arith.constant 1.702000e+00 : f32
    %117 = vector.broadcast %cst_57 : f32 to vector<8x128xf32>
    %118 = arith.mulf %117, %116 : vector<8x128xf32>
    %119 = arith.negf %118 : vector<8x128xf32>
    %120 = math.exp %119 : vector<8x128xf32>
    %cst_58 = arith.constant 1.000000e+00 : f32
    %121 = vector.broadcast %cst_58 : f32 to vector<8x128xf32>
    %122 = arith.addf %121, %120 : vector<8x128xf32>
    %123 = arith.divf %121, %122 : vector<8x128xf32>
    %124 = arith.mulf %116, %123 : vector<8x128xf32>
    %125 = arith.truncf %124 : vector<8x128xf32> to vector<8x128xbf16>
    %c0_59 = arith.constant 0 : index
    %c0_60 = arith.constant 0 : index
    %126 = vector.load %arg16[%c0_59, %c0_60] : memref<128x32xbf16, #tpu.memory_space<vmem>>, vector<128x32xbf16>
    %cst_61 = arith.constant dense<0.000000e+00> : vector<8x32xf32>
    %127 = tpu.matmul %125, %126, %cst_61 {dimension_numbers = #tpu.dot_dimension_numbers<[1], [0], [0], [1], [0, 0, 1, 1], [], []>} : vector<8x128xbf16>, vector<128x32xbf16>, vector<8x32xf32> -> vector<8x32xf32>
    %c0_62 = arith.constant 0 : index
    %c0_63 = arith.constant 0 : index
    %128 = vector.load %arg17[%c0_62, %c0_63] : memref<1x32xf32, #tpu.memory_space<vmem>>, vector<1x32xf32>
    %129 = vector.shape_cast %128 : vector<1x32xf32> to vector<32xf32>
    %130 = vector.shape_cast %129 : vector<32xf32> to vector<1x32xf32>
    %131 = vector.broadcast %130 : vector<1x32xf32> to vector<8x32xf32>
    %132 = arith.addf %127, %131 : vector<8x32xf32>
    %133 = arith.addf %132, %80 : vector<8x32xf32>
    %c0_64 = arith.constant 0 : index
    %c0_65 = arith.constant 0 : index
    %c0_66 = arith.constant 0 : index
    %134 = vector.load %arg18[%c0_64, %c0_65, %c0_66] : memref<1x8x32xf32, #tpu.memory_space<vmem>>, vector<1x8x32xf32>
    %135 = vector.shape_cast %134 : vector<1x8x32xf32> to vector<8x32xf32>
    %136 = vector.shape_cast %133 : vector<8x32xf32> to vector<1x8x32xf32>
    tpu.vector_store %arg18[%c0_64, %c0_65, %c0_66], %136 {strides = array<i32>} : memref<1x8x32xf32, #tpu.memory_space<vmem>>, vector<1x8x32xf32>,
    return
  }
  func.func @transform_0(%arg0: i32) -> (i32, i32, i32) {
    %c0_i32 = arith.constant 0 : i32
    %c0_i32_0 = arith.constant 0 : i32
    %c0_i32_1 = arith.constant 0 : i32
    return %arg0, %c0_i32, %c0_i32_0 : i32, i32, i32
  }
  func.func @transform_1(%arg0: i32) -> (i32, i32) {
    %c0_i32 = arith.constant 0 : i32
    %c0_i32_0 = arith.constant 0 : i32
    %c0_i32_1 = arith.constant 0 : i32
    return %c0_i32, %c0_i32_0 : i32, i32
  }
  func.func @transform_2(%arg0: i32) -> (i32, i32) {
    %c0_i32 = arith.constant 0 : i32
    %c0_i32_0 = arith.constant 0 : i32
    %c0_i32_1 = arith.constant 0 : i32
    return %c0_i32, %c0_i32_0 : i32, i32
  }
  func.func @transform_3(%arg0: i32) -> (i32, i32, i32) {
    %c0_i32 = arith.constant 0 : i32
    %c0_i32_0 = arith.constant 0 : i32
    %c0_i32_1 = arith.constant 0 : i32
    %c0_i32_2 = arith.constant 0 : i32
    return %c0_i32, %c0_i32_0, %c0_i32_1 : i32, i32, i32
  }
  func.func @transform_4(%arg0: i32) -> (i32, i32, i32) {
    %c0_i32 = arith.constant 0 : i32
    %c0_i32_0 = arith.constant 0 : i32
    %c0_i32_1 = arith.constant 0 : i32
    %c0_i32_2 = arith.constant 0 : i32
    return %c0_i32, %c0_i32_0, %c0_i32_1 : i32, i32, i32
  }
  func.func @transform_5(%arg0: i32) -> (i32, i32, i32) {
    %c0_i32 = arith.constant 0 : i32
    %c0_i32_0 = arith.constant 0 : i32
    %c0_i32_1 = arith.constant 0 : i32
    %c0_i32_2 = arith.constant 0 : i32
    return %c0_i32, %c0_i32_0, %c0_i32_1 : i32, i32, i32
  }
  func.func @transform_6(%arg0: i32) -> (i32, i32, i32) {
    %c0_i32 = arith.constant 0 : i32
    %c0_i32_0 = arith.constant 0 : i32
    %c0_i32_1 = arith.constant 0 : i32
    %c0_i32_2 = arith.constant 0 : i32
    return %c0_i32, %c0_i32_0, %c0_i32_1 : i32, i32, i32
  }
  func.func @transform_7(%arg0: i32) -> (i32, i32, i32) {
    %c0_i32 = arith.constant 0 : i32
    %c0_i32_0 = arith.constant 0 : i32
    %c0_i32_1 = arith.constant 0 : i32
    %c0_i32_2 = arith.constant 0 : i32
    return %c0_i32, %c0_i32_0, %c0_i32_1 : i32, i32, i32
  }
  func.func @transform_8(%arg0: i32) -> (i32, i32, i32) {
    %c0_i32 = arith.constant 0 : i32
    %c0_i32_0 = arith.constant 0 : i32
    %c0_i32_1 = arith.constant 0 : i32
    %c0_i32_2 = arith.constant 0 : i32
    return %c0_i32, %c0_i32_0, %c0_i32_1 : i32, i32, i32
  }
  func.func @transform_9(%arg0: i32) -> (i32, i32, i32) {
    %c0_i32 = arith.constant 0 : i32
    %c0_i32_0 = arith.constant 0 : i32
    %c0_i32_1 = arith.constant 0 : i32
    %c0_i32_2 = arith.constant 0 : i32
    return %c0_i32, %c0_i32_0, %c0_i32_1 : i32, i32, i32
  }
  func.func @transform_10(%arg0: i32) -> (i32, i32) {
    %c0_i32 = arith.constant 0 : i32
    %c0_i32_0 = arith.constant 0 : i32
    %c0_i32_1 = arith.constant 0 : i32
    return %c0_i32, %c0_i32_0 : i32, i32
  }
  func.func @transform_11(%arg0: i32) -> (i32, i32) {
    %c0_i32 = arith.constant 0 : i32
    %c0_i32_0 = arith.constant 0 : i32
    %c0_i32_1 = arith.constant 0 : i32
    return %c0_i32, %c0_i32_0 : i32, i32
  }
  func.func @transform_12(%arg0: i32) -> (i32, i32) {
    %c0_i32 = arith.constant 0 : i32
    %c0_i32_0 = arith.constant 0 : i32
    %c0_i32_1 = arith.constant 0 : i32
    return %c0_i32, %c0_i32_0 : i32, i32
  }
  func.func @transform_13(%arg0: i32) -> (i32, i32) {
    %c0_i32 = arith.constant 0 : i32
    %c0_i32_0 = arith.constant 0 : i32
    %c0_i32_1 = arith.constant 0 : i32
    return %c0_i32, %c0_i32_0 : i32, i32
  }
  func.func @transform_14(%arg0: i32) -> (i32, i32) {
    %c0_i32 = arith.constant 0 : i32
    %c0_i32_0 = arith.constant 0 : i32
    %c0_i32_1 = arith.constant 0 : i32
    return %c0_i32, %c0_i32_0 : i32, i32
  }
  func.func @transform_15(%arg0: i32) -> (i32, i32) {
    %c0_i32 = arith.constant 0 : i32
    %c0_i32_0 = arith.constant 0 : i32
    %c0_i32_1 = arith.constant 0 : i32
    return %c0_i32, %c0_i32_0 : i32, i32
  }
  func.func @transform_16(%arg0: i32) -> (i32, i32) {
    %c0_i32 = arith.constant 0 : i32
    %c0_i32_0 = arith.constant 0 : i32
    %c0_i32_1 = arith.constant 0 : i32
    return %c0_i32, %c0_i32_0 : i32, i32
  }
  func.func @transform_17(%arg0: i32) -> (i32, i32, i32) {
    %c0_i32 = arith.constant 0 : i32
    %c0_i32_0 = arith.constant 0 : i32
    %c0_i32_1 = arith.constant 0 : i32
    return %arg0, %c0_i32, %c0_i32_0 : i32, i32, i32
  }
}

</mosaic_0001>

<bundles_post_ra>
// kernel: tpu_custom_call.1
= control target key start
LH: loop header
LB: loop body
LE: loop exit
PB: predicated region body
PF: predicated region fallthrough
CT: control target
= control target key end

     0   :  { %s3343_s0 = inlined_call_operand.vmem [shape: f32[2,8,32], index: 0, kind: input, shape index: {}]   ;;  %s3344_s1 = inlined_call_operand.vmem [shape: f32[1,32], index: 1, kind: input, shape index: {}]   ;;  %s3345_s2 = inlined_call_operand.vmem [shape: f32[1,32], index: 2, kind: input, shape index: {}]   ;;  %s3346_s3 = inlined_call_operand.vmem [shape: bf16[4,32,8], index: 3, kind: input, shape index: {}]   ;;  %s3347_s4 = inlined_call_operand.vmem [shape: f32[4,1,8], index: 4, kind: input, shape index: {}]   ;;  %s3348_s5 = inlined_call_operand.vmem [shape: bf16[4,32,8], index: 5, kind: input, shape index: {}]   ;;  %s3349_s6 = inlined_call_operand.vmem [shape: f32[4,1,8], index: 6, kind: input, shape index: {}]   ;;  %s3350_s7 = inlined_call_operand.vmem [shape: bf16[4,32,8], index: 7, kind: input, shape index: {}]   ;;  %s3351_s8 = inlined_call_operand.vmem [shape: f32[4,1,8], index: 8, kind: input, shape index: {}]   ;;  %s3352_s9 = inlined_call_operand.vmem [shape: bf16[4,8,32], index: 9, kind: input, shape index: {}]   ;;  %s3353_s10 = inlined_call_operand.vmem [shape: f32[1,32], index: 10, kind: input, shape index: {}]   ;;  %s3354_s11 = inlined_call_operand.vmem [shape: f32[1,32], index: 11, kind: input, shape index: {}]   ;;  %s3355_s12 = inlined_call_operand.vmem [shape: f32[1,32], index: 12, kind: input, shape index: {}]   ;;  %s3356_s13 = inlined_call_operand.vmem [shape: bf16[32,128], index: 13, kind: input, shape index: {}]   ;;  %s3357_s14 = inlined_call_operand.vmem [shape: f32[1,128], index: 14, kind: input, shape index: {}]   ;;  %s3358_s15 = inlined_call_operand.vmem [shape: bf16[128,32], index: 15, kind: input, shape index: {}]   ;;  %s3359_s16 = inlined_call_operand.vmem [shape: f32[1,32], index: 16, kind: input, shape index: {}]   ;;  %s3360_s17 = inlined_call_operand.hbm [shape: f32[2,8,32], index: 17, kind: output, shape index: {}]  }
   0x1   :  { %3364 = sst [smem:[#allocation8_spill]] %s3343_s0 }
   0x2   :  { %3365 = sst [smem:[#allocation9_spill]] %s3344_s1 }
   0x3   :  { %3366 = sst [smem:[#allocation10_spill]] %s3345_s2 }
   0x4   :  { %3367 = sst [smem:[#allocation11_spill]] %s3346_s3 }
   0x5   :  { %22 = vsyncpa [#allocation3], 0 }
   0x6   :  { %24 = vsyncpa [#allocation3 + $0x1], 0  ;;  %s2888_s24 = smov 0   ;;  %s2890_s25 = smov 0  }
   0x7   :  { %s2892_s26 = smov 0   ;;  %s2894_s27 = smov 0  }
   0x8 LB: > { %3368 = sst [smem:[#allocation5_spill]] %s2789_s26  ;;  %s2909_s28 = sadd.s32 4294967295, %s2793_s27   ;;  %s2793_s27 = sphi %s2894_s27, %s3377_s27   ;;  %s2789_s26 = sphi %s2892_s26, %s3379_s26   ;;  %s2785_s25 = sphi %s2890_s25, %s3381_s25   ;;  %s2781_s24 = sphi %s2888_s24, %s3380_s24  }
   0x9   : > { %s2277_s29 = sadd.s32 4294967294, %s2793_s27   ;;  %s2913_s0 = sadd.s32 1, %s2793_s27  }
   0xa   : > { %3369 = sst [smem:[#allocation6_spill]] %s2913_s0  ;;  %s399_s30 = sadd.s32 1, %s2789_s26 }
   0xb   : > { %s396_s18 = ssub.s32 %s2793_s27, %s2913_s0  ;;  %p409_p0 = scmp.ne.s32.totalorder %s2789_s26, %s2785_s25 }
   0xc   : > { %p397_p1 = scmp.eq.s32.totalorder %s396_s18, 0  ;;  %p410_p2 = scmp.eq.s32.totalorder %s2909_s28, 1 }
   0xd   : > { %p415_p3 = scmp.ne.s32.totalorder %s2785_s25, %s2781_s24  ;;  %p416_p4 = scmp.eq.s32.totalorder %s2277_s29, 1 }
   0xe   : > { %s2924_s19 = scalar_select %p397_p1, %s2789_s26, %s399_s30  }
   0xf   : > { %p2926_p5 = por %p410_p2, %p409_p0  ;;  %p2930_p6 = por %p416_p4, %p415_p3 }
  0x10   : > { %3370 = sst [smem:[#allocation7_spill]] %s2924_s19  ;;  %p2280_p7 = scmp.ge.s32.totalorder %s2793_s27, 1 }
  0x11   : > { %p489_p8 = scmp.lt.s32.totalorder %s2793_s27, 3 }
  0x13   : > { %p490_p9 = pnand %p2280_p7, %p489_p8 }
  0x14   : > { %p540_p10 = scmp.lt.s32.totalorder (!%p490_p9), %s2909_s28, 1  ;;  %s3373_s30 = sld [smem:[#allocation8_spill]] (!%p490_p9) }
  0x15   : > { %493 = sbr.rel (%p490_p9) target bundleno = 2239 (0x8bf), region = 88  ;;  %s3374_s3 = sld [smem:[#allocation11_spill]] (!%p490_p9) }
  0x16   : > { %s3376_s2 = sld [smem:[#allocation10_spill]] (!%p490_p9)  ;;  %s2363_s23 = sshll.u32 (!%p490_p9), %s2909_s28, 7 }
  0x1a   : > { %s541_s21 = scalar_select %p540_p10, %s2909_s28, 1  ;;  %vm548_vm0 = vcmask 261120   ;;  %v2795_v9 = vmov 0.0   ;;  %vm2796_vm1 = vmmov 0   ;;  %v2680_v22 = vld [vmem:[%s3348_s5 + $0x18] sm:$0xff]   ;;  %v2682_v25 = vld [vmem:[%s3348_s5 + $0x10] sm:$0xff]  }
  0x1b   : > { %v2675_v7 = vld [vmem:[%s3374_s3 + $0x8] sm:$0xff]   ;;  %v2676_v8 = vld [vmem:[%s3374_s3 + $0x38] sm:$0xff]   ;;  %2438 = vmatprep.subr.bf16.mxu0 %v2795_v9  ;;  %2462 = vmatprep.subr.bf16.mxu1 %v2795_v9  ;;  %v2677_v10 = vld [vmem:[%s3374_s3] sm:$0xff]   ;;  %vm1345_vm2 = vcmask 64512   ;;  %vm1596_vm3 = vcmask 1043456  }
  0x1c   : > { %s2282_s22 = sshll.u32 %s541_s21, 3  ;;  %2439 = vmatpush3.bf16.msra.mxu0 %v2675_v7  ;;  %2463 = vmatpush3.bf16.msra.mxu1 %v2676_v8  ;;  %v2678_v11 = vld [vmem:[%s3374_s3 + $0x30] sm:$0xff]   ;;  %v2284_v18 = vld [vmem:[%s3376_s2] ss:$0 sm:$0xff]  ;;  %v2679_v21 = vld [vmem:[%s3374_s3 + $0x18] sm:$0xff]   ;;  %s3301_s2 = scalar_lea.hbm %s3360_s17, %s2363_s23 }
  0x1d   : > { %s543_s18 = scalar_lea.vmem %s3373_s30, %s2282_s22  ;;  %2440 = vmatprep.subr.bf16.mxu0 %v2795_v9  ;;  %2464 = vmatprep.subr.bf16.mxu1 %v2795_v9  ;;  %s3375_s22 = sld [smem:[#allocation9_spill]]  ;;  %v2681_v24 = vld [vmem:[%s3374_s3 + $0x10] sm:$0xff]   ;;  %v2683_v26 = vld [vmem:[%s3374_s3 + $0x28] sm:$0xff]   ;;  %v2684_v27 = vld [vmem:[%s3348_s5 + $0x38] sm:$0xff]  }
  0x1e   : > { %v2941_v0 = vld [vmem:[%s543_s18] sm:$0xff]  ;;  %2442 = vmatprep.mubr.msk.bf16.mxu0 %vm2796_vm1, %v2795_v9  ;;  %2466 = vmatprep.mubr.msk.bf16.mxu1 %vm2796_vm1, %v2795_v9  ;;  %v2686_v29 = vld [vmem:[%s3348_s5 + $0x30] sm:$0xff]   ;;  %v2687_v30 = vld [vmem:[%s3348_s5 + $0x8] sm:$0xff]   ;;  %s537_s30 = sand.u32 1, %s2785_s25   ;;  %s2797_s18 = smov [#allocation2]  }
  0x1f   : > { %v549_v1 = vsel %vm548_vm0, %v2941_v0, 0.0  ;;  %v2685_v28 = vld [vmem:[%s3374_s3 + $0x20] sm:$0xff]   ;;  %v2688_v31 = vld [vmem:[%s3350_s7 + $0x18] sm:$0xff]   ;;  %v2690_v33 = vld [vmem:[%s3350_s7 + $0x10] sm:$0xff]   ;;  %s2281_s19 = sshll.u32 %s537_s30, 3  ;;  %s2205_s28 = scalar_lea.sflag [#allocation3], %s537_s30 }
  0x20   : > { %550 = vadd.xlane.f32.xlu0 %v549_v1  ;;  %2441 = vmatpush3.bf16.msra.mxu0 %v2677_v10  ;;  %v2689_v32 = vld [vmem:[%s3348_s5] sm:$0xff]   ;;  %v2691_v34 = vld [vmem:[%s3348_s5 + $0x28] sm:$0xff]   ;;  %v2692_v35 = vld [vmem:[%s3350_s7 + $0x38] sm:$0xff]   ;;  %s2737_s21 = sshll.u32 %s2797_s18, 4  ;;  %s2738_s21 = int_to_ptr.vmem [resolvable:$false] %s2737_s21 }
  0x21   : > { %2465 = vmatpush3.bf16.msra.mxu1 %v2678_v11  ;;  %2446 = vmatprep.subr.bf16.mxu0 %v2795_v9  ;;  %v2693_v36 = vld [vmem:[%s3348_s5 + $0x20] sm:$0xff]   ;;  %v2694_v37 = vld [vmem:[%s3350_s7 + $0x30] sm:$0xff]   ;;  %v2695_v38 = vld [vmem:[%s3350_s7 + $0x8] sm:$0xff]   ;;  %s2739_s23 = scalar_lea.vmem %s2738_s21, 256 }
  0x22   : > { %2478 = vmatprep.subr.bf16.mxu1 %v2795_v9  ;;  %v2696_v39 = vld [vmem:[%s3350_s7] sm:$0xff]   ;;  %v2697_v40 = vld [vmem:[%s3350_s7 + $0x28] sm:$0xff]  }
  0x23   : > { %v2283_v16 = vld [vmem:[%s3375_s22] ss:$0 sm:$0xff]  ;;  %v2302_v50 = vld [vmem:[%s3349_s6 + $0x1] ss:$0 sm:$0xff]  ;;  %v2304_v63 = vld [vmem:[%s3349_s6 + $0x3] ss:$0 sm:$0xff] }
  0x24   : > { %v2698_v41 = vld [vmem:[%s3350_s7 + $0x20] sm:$0xff]   ;;  %s539_s22 = scalar_lea.vmem [#allocation2], %s2281_s19 }
  0x25   : > { %v2286_v57 = vld [vmem:[%s3347_s4 + $0x1] ss:$0 sm:$0xff]  ;;  %v2288_v10 = vld [vmem:[%s3347_s4 + $0x3] ss:$0 sm:$0xff]  ;;  %s2218_s29 = sshll.u32 %s539_s22, 4  ;;  %s3303_s29 = int_to_ptr.vmem [resolvable:$true] %s2218_s29 }
  0x26   : > { %s2733_s19 = scalar_lea.vmem %s3303_s29, 128  ;;  %p2740_p0 = scmp.lt.s32.totalorder %s3303_s29, %s2738_s21 }
  0x27   : > { %p2734_p11 = scmp.ne.s32.totalorder %s3303_s29, %s2733_s19  ;;  %p2741_p1 = scmp.lt.s32.totalorder %s2739_s23, %s2733_s19 }
  0x29   : > { %p2735_p12 = pnand %p2734_p11, %p2926_p5  ;;  %p2742_p2 = por %p2741_p1, %p2740_p0 }
  0x2b   : > { %p2736_p13 = pneg %p2735_p12 }
  0x2d   : > { %p2743_p3 = pnand %p2742_p2, %p2736_p13 }
  0xa9   : > { %v551_v2 = vpop.xlane.xlu0 %550 }
  0xaa   : > { %v553_v3 = vmul.f32 0.03125, %v551_v2 }
  0xac   : > { %v554_v4 = vsub.f32 %v2941_v0, %v553_v3 }
  0xae   : > { %v555_v5 = vmul.f32 %v554_v4, %v554_v4 }
  0xb0   : > { %v556_v6 = vsel %vm548_vm0, %v555_v5, 0.0 }
  0xb1   : > { %557 = vadd.xlane.f32.xlu0 %v556_v6 }
 0x13a   : > { %v558_v12 = vpop.xlane.xlu0 %557 }
 0x13b   : > { %v559_v13 = vmul.f32 0.03125, %v558_v12 }
 0x13d   : > { %v560_v14 = vadd.f32 1e-05, %v559_v13 }
 0x13f   : > { %2709 = vrsqrt.f32 %v560_v14 }
 0x14c   : > { %v2710_v15 = vpop.eup %2709 }
 0x14d   : > { %v562_v17 = vmul.f32 %v2710_v15, %v554_v4 }
 0x14f   : > { %v569_v19 = vmul.f32 %v2283_v16, %v562_v17  ;;  %v2301_v16 = vld [vmem:[%s3349_s6] ss:$0 sm:$0xff]  ;;  %v2318_v17 = vld [vmem:[%s3351_s8 + $0x1] ss:$0 sm:$0xff] }
 0x151   : > { %v576_v20 = vadd.f32 %v2284_v18, %v569_v19 }
 0x153   : > { %v2981_v23 = vpack.c.bf16 %v576_v20, %v576_v20 }
 0x155   : > { %2443 = vmatmul.mubr.msk.bf16.vlgmr.msra.gmra.mxu0 %vm548_vm0, %v2981_v23  ;;  %2467 = vmatmul.mubr.msk.bf16.vlgmr.msra.gmra.mxu1 %vm548_vm0, %v2981_v23 }
 0x156   : > { %2447 = vmatpush3.bf16.msra.mxu0 %v2679_v21  ;;  %2479 = vmatpush3.bf16.msra.mxu1 %v2680_v22 }
 0x157   : > { %2448 = vmatprep.subr.bf16.mxu0 %v2795_v9  ;;  %2480 = vmatprep.subr.bf16.mxu1 %v2795_v9 }
 0x158   : > { %2450 = vmatprep.mubr.msk.bf16.mxu0 %vm2796_vm1, %v2795_v9  ;;  %2482 = vmatprep.mubr.msk.bf16.mxu1 %vm2796_vm1, %v2795_v9 }
 0x15a   : > { %2449 = vmatpush3.bf16.msra.mxu0 %v2681_v24  ;;  %2481 = vmatpush3.bf16.msra.mxu1 %v2682_v25 }
 0x15b   : > { %2454 = vmatprep.subr.bf16.mxu0 %v2795_v9  ;;  %2494 = vmatprep.subr.bf16.mxu1 %v2795_v9 }
 0x15d   : > { %2451 = vmatmul.mubr.msk.bf16.vlgmr.msra.gmra.mxu0 %vm548_vm0, %v2981_v23  ;;  %2483 = vmatmul.mubr.msk.bf16.vlgmr.msra.gmra.mxu1 %vm548_vm0, %v2981_v23 }
 0x15e   : > { %2455 = vmatpush3.bf16.msra.mxu0 %v2683_v26  ;;  %2495 = vmatpush3.bf16.msra.mxu1 %v2684_v27 }
 0x15f   : > { %2456 = vmatprep.subr.bf16.mxu0 %v2795_v9  ;;  %2496 = vmatprep.subr.bf16.mxu1 %v2795_v9 }
 0x160   : > { %2458 = vmatprep.mubr.msk.bf16.mxu0 %vm2796_vm1, %v2795_v9  ;;  %2498 = vmatprep.mubr.msk.bf16.mxu1 %vm2796_vm1, %v2795_v9 }
 0x162   : > { %2457 = vmatpush3.bf16.msra.mxu0 %v2685_v28  ;;  %2497 = vmatpush3.bf16.msra.mxu1 %v2686_v29  ;;  %v2285_v28 = vld [vmem:[%s3347_s4] ss:$0 sm:$0xff] }
 0x163   : > { %2470 = vmatprep.subr.bf16.mxu0 %v2795_v9  ;;  %2510 = vmatprep.subr.bf16.mxu1 %v2795_v9 }
 0x165   : > { %2459 = vmatmul.mubr.msk.bf16.vlgmr.msra.gmra.mxu0 %vm548_vm0, %v2981_v23  ;;  %2499 = vmatmul.mubr.msk.bf16.vlgmr.msra.gmra.mxu1 %vm548_vm0, %v2981_v23 }
 0x166   : > { %2471 = vmatpush3.bf16.msra.mxu0 %v2687_v30  ;;  %2511 = vmatpush3.bf16.msra.mxu1 %v2688_v31 }
 0x167   : > { %2472 = vmatprep.subr.bf16.mxu0 %v2795_v9  ;;  %2512 = vmatprep.subr.bf16.mxu1 %v2795_v9 }
 0x168   : > { %2474 = vmatprep.mubr.msk.bf16.mxu0 %vm2796_vm1, %v2795_v9  ;;  %2514 = vmatprep.mubr.msk.bf16.mxu1 %vm2796_vm1, %v2795_v9 }
 0x16a   : > { %2473 = vmatpush3.bf16.msra.mxu0 %v2689_v32  ;;  %2513 = vmatpush3.bf16.msra.mxu1 %v2690_v33 }
 0x16b   : > { %2486 = vmatprep.subr.bf16.mxu0 %v2795_v9  ;;  %2526 = vmatprep.subr.bf16.mxu1 %v2795_v9 }
 0x16d   : > { %2475 = vmatmul.mubr.msk.bf16.vlgmr.msra.gmra.mxu0 %vm548_vm0, %v2981_v23  ;;  %2515 = vmatmul.mubr.msk.bf16.vlgmr.msra.gmra.mxu1 %vm548_vm0, %v2981_v23 }
 0x16e   : > { %2487 = vmatpush3.bf16.msra.mxu0 %v2691_v34  ;;  %2527 = vmatpush3.bf16.msra.mxu1 %v2692_v35  ;;  %v2303_v35 = vld [vmem:[%s3349_s6 + $0x2] ss:$0 sm:$0xff] }
 0x16f   : > { %2488 = vmatprep.subr.bf16.mxu0 %v2795_v9  ;;  %2528 = vmatprep.subr.bf16.mxu1 %v2795_v9 }
 0x170   : > { %2490 = vmatprep.mubr.msk.bf16.mxu0 %vm2796_vm1, %v2795_v9  ;;  %2530 = vmatprep.mubr.msk.bf16.mxu1 %vm2796_vm1, %v2795_v9 }
 0x172   : > { %2489 = vmatpush3.bf16.msra.mxu0 %v2693_v36  ;;  %2529 = vmatpush3.bf16.msra.mxu1 %v2694_v37 }
 0x173   : > { %2502 = vmatprep.subr.bf16.mxu0 %v2795_v9  ;;  %2540 = vmatprep.subr.bf16.mxu1 %v2795_v9 }
 0x175   : > { %2491 = vmatmul.mubr.msk.bf16.vlgmr.msra.gmra.mxu0 %vm548_vm0, %v2981_v23  ;;  %2531 = vmatmul.mubr.msk.bf16.vlgmr.msra.gmra.mxu1 %vm548_vm0, %v2981_v23 }
 0x176   : > { %2503 = vmatpush3.bf16.msra.mxu0 %v2695_v38  ;;  %2506 = vmatprep.mubr.msk.bf16.mxu0 %vm2796_vm1, %v2795_v9 }
 0x177   : > { %2504 = vmatprep.subr.bf16.mxu0 %v2795_v9  ;;  %2542 = vmatprep.mubr.msk.bf16.mxu1 %vm2796_vm1, %v2795_v9 }
 0x17a   : > { %2505 = vmatpush3.bf16.msra.mxu0 %v2696_v39 }
 0x17b   : > { %2518 = vmatprep.subr.bf16.mxu0 %v2795_v9 }
 0x17d   : > { %2507 = vmatmul.mubr.msk.bf16.vlgmr.msra.gmra.mxu0 %vm548_vm0, %v2981_v23 }
 0x17e   : > { %2519 = vmatpush3.bf16.msra.mxu0 %v2697_v40  ;;  %2522 = vmatprep.mubr.msk.bf16.mxu0 %vm2796_vm1, %v2795_v9 }
 0x17f   : > { %2520 = vmatprep.subr.bf16.mxu0 %v2795_v9 }
 0x182   : > { %2521 = vmatpush3.bf16.msra.mxu0 %v2698_v41 }
 0x183   : > { %2534 = vmatprep.subr.bf16.mxu0 %v2795_v9 }
 0x185   : > { %2523 = vmatmul.mubr.msk.bf16.vlgmr.msra.gmra.mxu0 %vm548_vm0, %v2981_v23 }
 0x186   : > { %2536 = vmatprep.mubr.msk.bf16.mxu0 %vm2796_vm1, %v2795_v9 }
 0x215   : > { %v3105_v42 = vpop.f32.mrf.mxu0  ;;  %v827_v43 = vpop.f32.mrf.mxu1 }
 0x216   : > { %v828_v18 = vadd.f32 %v2288_v10, %v827_v43  ;;  %v672_v36 = vadd.f32 %v2285_v28, %v3105_v42 }
 0x217   : > { %v2444_v44 = vpop.f32.mrf.mxu0  ;;  %v2468_v45 = vpop.f32.mrf.mxu1 }
 0x218   : > { %v1340_v25 = vpack.c.bf16 %v828_v18, %v828_v18  ;;  %v1337_v43 = vpack.c.bf16 %v672_v36, %v672_v36  ;;  %v2287_v45 = vld [vmem:[%s3347_s4 + $0x2] ss:$0 sm:$0xff] }
 0x219   : > { %v674_v46 = vpop.f32.mrf.mxu0  ;;  %v830_v47 = vpop.f32.mrf.mxu1 }
 0x21b   : > { %v2445_v48 = vpop.f32.mrf.mxu0  ;;  %v2469_v49 = vpop.f32.mrf.mxu1 }
 0x21d   : > { %v723_v51 = vpop.f32.mrf.mxu0  ;;  %v975_v52 = vpop.f32.mrf.mxu1 }
 0x21e   : > { %v976_v53 = vadd.f32 %v2302_v50, %v975_v52  ;;  %v724_v1 = vadd.f32 %v2286_v57, %v723_v51  ;;  %v2317_v50 = vld [vmem:[%s3351_s8] ss:$0 sm:$0xff] }
 0x21f   : > { %v2452_v54 = vpop.f32.mrf.mxu0  ;;  %v2484_v55 = vpop.f32.mrf.mxu1 }
 0x220   : > { %v1342_v56 = vpack.c.bf16 %v976_v53, %v976_v53  ;;  %v1338_v7 = vpack.c.bf16 %v724_v1, %v724_v1 }
 0x221   : > { %v726_v58 = vpop.f32.mrf.mxu0  ;;  %v978_v59 = vpop.f32.mrf.mxu1 }
 0x222   : > { %v1396_v60 = vsel %vm1345_vm2, %v1342_v56, 0 }
 0x223   : > { %v2453_v61 = vpop.f32.mrf.mxu0  ;;  %v2485_v62 = vpop.f32.mrf.mxu1  ;;  %2541 = vmatpush3.bf16.xpose.msra.mxu1 %v1396_v60 }
 0x224   : > { %2552 = vmatprep.subr.bf16.mxu1 %v2795_v9 }
 0x225   : > { %v775_v2 = vpop.f32.mrf.mxu0  ;;  %v1079_v3 = vpop.f32.mrf.mxu1 }
 0x226   : > { %v1080_v4 = vadd.f32 %v2304_v63, %v1079_v3  ;;  %v776_v51 = vadd.f32 %v2287_v45, %v775_v2 }
 0x227   : > { %v2460_v5 = vpop.f32.mrf.mxu0  ;;  %v2500_v6 = vpop.f32.mrf.mxu1 }
 0x228   : > { %v1344_v8 = vpack.c.bf16 %v1080_v4, %v1080_v4  ;;  %v1339_v55 = vpack.c.bf16 %v776_v51, %v776_v51  ;;  %v1530_v5 = vlaneseq }
 0x229   : > { %v778_v11 = vpop.f32.mrf.mxu0  ;;  %v1082_v12 = vpop.f32.mrf.mxu1 }
 0x22a   : > { %v1488_v13 = vsel %vm1345_vm2, %v1344_v8, 0  ;;  %2543 = vmatmul.mubr.msk.bf16.vlgmr.msra.gmra.mxu1 %vm1345_vm2, %v1338_v7  ;;  %v1531_v8 = vshrl.u32 %v1530_v5, 7  ;;  %v1533_v10 = vand.u32 127, %v1530_v5 }
 0x22b   : > { %v2461_v14 = vpop.f32.mrf.mxu0  ;;  %v2501_v15 = vpop.f32.mrf.mxu1  ;;  %2553 = vmatpush3.bf16.xpose.msra.mxu1 %v1488_v13  ;;  %2554 = vmatprep.mubr.msk.bf16.mxu1 %vm2796_vm1, %v2795_v9 }
 0x22c   : > { %2564 = vmatprep.subr.bf16.mxu1 %v2795_v9  ;;  %vm1534_vm4 = vcmp.gt.s32.totalorder %v1533_v10, %v1531_v8 }
 0x22d   : > { %v923_v19 = vpop.f32.mrf.mxu0  ;;  %v1227_v20 = vpop.f32.mrf.mxu1 }
 0x22e   : > { %v924_v21 = vadd.f32 %v2301_v16, %v923_v19  ;;  %v1228_v22 = vadd.f32 %v2318_v17, %v1227_v20 }
 0x22f   : > { %v2476_v23 = vpop.f32.mrf.mxu0  ;;  %v2516_v24 = vpop.f32.mrf.mxu1 }
 0x230   : > { %v1341_v26 = vpack.c.bf16 %v924_v21, %v924_v21  ;;  %v1590_v27 = vpack.c.bf16 %v1228_v22, %v1228_v22 }
 0x231   : > { %v926_v29 = vpop.f32.mrf.mxu0  ;;  %v1230_v30 = vpop.f32.mrf.mxu1 }
 0x232   : > { %v1350_v31 = vsel %vm1345_vm2, %v1341_v26, 0  ;;  %v1644_v32 = vsel %vm1596_vm3, %v1590_v27, 0  ;;  %2555 = vmatmul.mubr.msk.bf16.vlgmr.msra.gmra.mxu1 %vm1345_vm2, %v1340_v25 }
 0x233   : > { %v2477_v33 = vpop.f32.mrf.mxu0  ;;  %v2517_v34 = vpop.f32.mrf.mxu1  ;;  %2535 = vmatpush3.bf16.xpose.msra.mxu0 %v1350_v31  ;;  %2565 = vmatpush3.bf16.msra.mxu1 %v1644_v32 }
 0x234   : > { %2546 = vmatprep.subr.bf16.mxu0 %v2795_v9  ;;  %2566 = vmatprep.mubr.msk.bf16.mxu1 %vm2796_vm1, %v2795_v9 }
 0x235   : > { %v1027_v37 = vpop.f32.mrf.mxu0  ;;  %v3145_v38 = vpop.f32.mrf.mxu1  ;;  %2576 = vmatprep.subr.bf16.mxu1 %v2795_v9 }
 0x236   : > { %v1028_v39 = vadd.f32 %v2303_v35, %v1027_v37 }
 0x237   : > { %v2492_v40 = vpop.f32.mrf.mxu0  ;;  %v2532_v41 = vpop.f32.mrf.mxu1 }
 0x238   : > { %v1343_v44 = vpack.c.bf16 %v1028_v39, %v1028_v39 }
 0x239   : > { %v1030_v42 = vpop.f32.mrf.mxu0  ;;  %v1334_v46 = vpop.f32.mrf.mxu1 }
 0x23a   : > { %v1442_v47 = vsel %vm1345_vm2, %v1343_v44, 0  ;;  %2537 = vmatmul.mubr.msk.bf16.vlgmr.msra.gmra.mxu0 %vm1345_vm2, %v1337_v43 }
 0x23b   : > { %v2493_v48 = vpop.f32.mrf.mxu0  ;;  %v2533_v49 = vpop.f32.mrf.mxu1  ;;  %2547 = vmatpush3.bf16.xpose.msra.mxu0 %v1442_v47  ;;  %2548 = vmatprep.mubr.msk.bf16.mxu0 %vm2796_vm1, %v2795_v9 }
 0x23c   : > { %2558 = vmatprep.subr.bf16.mxu0 %v2795_v9 }
 0x23d   : > { %v1175_v52 = vpop.f32.mrf.mxu0 }
 0x23e   : > { %v1176_v53 = vadd.f32 %v2317_v50, %v1175_v52  ;;  %v2319_v52 = vld [vmem:[%s3351_s8 + $0x2] ss:$0 sm:$0xff] }
 0x23f   : > { %v2508_v54 = vpop.f32.mrf.mxu0 }
 0x240   : > { %v1589_v56 = vpack.c.bf16 %v1176_v53, %v1176_v53 }
 0x241   : > { %v1178_v57 = vpop.f32.mrf.mxu0 }
 0x242   : > { %v1598_v58 = vsel %vm1596_vm3, %v1589_v56, 0  ;;  %2549 = vmatmul.mubr.msk.bf16.vlgmr.msra.gmra.mxu0 %vm1345_vm2, %v1339_v55  ;;  %v2320_v56 = vld [vmem:[%s3351_s8 + $0x3] ss:$0 sm:$0xff] }
 0x243   : > { %v2509_v59 = vpop.f32.mrf.mxu0  ;;  %2559 = vmatpush3.bf16.msra.mxu0 %v1598_v58  ;;  %2560 = vmatprep.mubr.msk.bf16.mxu0 %vm2796_vm1, %v2795_v9  ;;  %v1332_v58 = vadd.f32 %v2320_v56, %v3145_v38 }
 0x244   : > { %2570 = vmatprep.subr.bf16.mxu0 %v2795_v9 }
 0x245   : > { %v3164_v60 = vpop.f32.mrf.mxu0 }
 0x246   : > { %v1280_v55 = vadd.f32 %v2319_v52, %v3164_v60 }
 0x247   : > { %v2524_v61 = vpop.f32.mrf.mxu0 }
 0x248   : > { %v1591_v59 = vpack.c.bf16 %v1280_v55, %v1280_v55 }
 0x249   : > { %v1282_v62 = vpop.f32.mrf.mxu0 }
 0x24b   : > { %v2525_v63 = vpop.f32.mrf.mxu0 }
 0x2ea   : > { %v1432_v1 = vpop.f32.mrf.mxu1 }
 0x2eb   : > { %v1538_v17 = vsel %vm1534_vm4, -inf, %v1432_v1  ;;  %v1592_v1 = vpack.c.bf16 %v1332_v58, %v1332_v58  ;;  %v2345_v58 = vld [vmem:[%s3353_s10] ss:$0 sm:$0xff] }
 0x2ec   : > { %v2544_v2 = vpop.f32.mrf.mxu1  ;;  %v1544_v20 = vsel %vm1345_vm2, %v1538_v17, -inf }
 0x2ed   : > { %v1690_v2 = vsel %vm1596_vm3, %v1591_v59, 0  ;;  %v1736_v38 = vsel %vm1596_vm3, %v1592_v1, 0 }
 0x2ee   : > { %v1435_v3 = vpop.f32.mrf.mxu1 }
 0x2f0   : > { %v2545_v4 = vpop.f32.mrf.mxu1 }
 0x2f2   : > { %v1524_v6 = vpop.f32.mrf.mxu1 }
 0x2f3   : > { %v1540_v21 = vsel %vm1534_vm4, -inf, %v1524_v6  ;;  %v1782_v6 = vld [vmem:[%s3352_s9] sm:$0xf] }
 0x2f4   : > { %v2556_v7 = vpop.f32.mrf.mxu1  ;;  %v1550_v25 = vsel %vm1345_vm2, %v1540_v21, -inf }
 0x2f6   : > { %v1527_v11 = vpop.f32.mrf.mxu1 }
 0x2f7   : > { %v1790_v11 = vsel %vm1596_vm3, %v1782_v6, 0 }
 0x2f8   : > { %v2557_v12 = vpop.f32.mrf.mxu1 }
 0x2fa   : > { %v1386_v13 = vpop.f32.mrf.mxu0 }
 0x2fb   : > { %v1537_v14 = vsel %vm1534_vm4, -inf, %v1386_v13  ;;  %v1783_v13 = vld [vmem:[%s3352_s9 + $0x4] sm:$0xf] }
 0x2fc   : > { %v2538_v15 = vpop.f32.mrf.mxu0  ;;  %v1541_v16 = vsel %vm1345_vm2, %v1537_v14, -inf }
 0x2fd   : > { %1542 = vmax.xlane.f32.xlu1 %v1541_v16  ;;  %v1784_v15 = vld [vmem:[%s3352_s9 + $0x8] sm:$0xf] }
 0x2fe   : > { %v1389_v18 = vpop.f32.mrf.mxu0 }
 0x2ff   : > { %v1882_v18 = vsel %vm1596_vm3, %v1784_v15, 0 }
 0x300   : > { %v2539_v19 = vpop.f32.mrf.mxu0 }
 0x301   : > { %1545 = vmax.xlane.f32.xlu1 %v1544_v20  ;;  %v1785_v20 = vld [vmem:[%s3352_s9 + $0xc] sm:$0xf] }
 0x302   : > { %v1478_v22 = vpop.f32.mrf.mxu0 }
 0x303   : > { %v1539_v23 = vsel %vm1534_vm4, -inf, %v1478_v22 }
 0x304   : > { %v2550_v24 = vpop.f32.mrf.mxu0  ;;  %v1547_v26 = vsel %vm1345_vm2, %v1539_v23, -inf }
 0x305   : > { %1551 = vmax.xlane.f32.xlu1 %v1550_v25  ;;  %1548 = vmax.xlane.f32.xlu0 %v1547_v26  ;;  %v1928_v24 = vsel %vm1596_vm3, %v1785_v20, 0  ;;  %v2701_v20 = vld [vmem:[%s3358_s15 + $0x38] sm:$0xff]  }
 0x306   : > { %v1481_v27 = vpop.f32.mrf.mxu0 }
 0x308   : > { %v2551_v28 = vpop.f32.mrf.mxu0 }
 0x386   : > { %v1543_v29 = vpop.xlane.xlu1 %1542 }
 0x387   : > { %v1553_v30 = vsub.f32 %v1537_v14, %v1543_v29  ;;  %v1836_v14 = vsel %vm1596_vm3, %v1783_v13, 0 }
 0x389   : > { %v1557_v31 = vmul.f32 1.442695, %v1553_v30 }
 0x38a   : > { %v1546_v32 = vpop.xlane.xlu1 %1545 }
 0x38b   : > { %2711 = vpow2.f32 %v1557_v31  ;;  %v1554_v33 = vsub.f32 %v1538_v17, %v1546_v32 }
 0x38d   : > { %v1559_v34 = vmul.f32 1.442695, %v1554_v33 }
 0x38e   : > { %v1552_v35 = vpop.xlane.xlu1 %1551  ;;  %v1549_v36 = vpop.xlane.xlu0 %1548 }
 0x38f   : > { %2713 = vpow2.f32 %v1559_v34  ;;  %v1556_v37 = vsub.f32 %v1540_v21, %v1552_v35  ;;  %v1555_v39 = vsub.f32 %v1539_v23, %v1549_v36 }
 0x391   : > { %v1563_v40 = vmul.f32 1.442695, %v1556_v37  ;;  %v1561_v41 = vmul.f32 1.442695, %v1555_v39 }
 0x393   : > { %2715 = vpow2.f32 %v1563_v40 }
 0x394   : > { %2717 = vpow2.f32 %v1561_v41 }
 0x398   : > { %v2712_v43 = vpop.eup %2711 }
 0x399   : > { %v1565_v44 = vsel %vm1345_vm2, %v2712_v43, 0.0 }
 0x39a   : > { %1566 = vadd.xlane.f32.xlu0 %v1565_v44 }
 0x39c   : > { %v2714_v45 = vpop.eup %2713 }
 0x39d   : > { %v1568_v42 = vsel %vm1345_vm2, %v2714_v45, 0.0 }
 0x39e   : > { %1569 = vadd.xlane.f32.xlu1 %v1568_v42 }
 0x3a0   : > { %v2716_v46 = vpop.eup %2715 }
 0x3a1   : > { %v2718_v47 = vpop.eup %2717  ;;  %v1574_v48 = vsel %vm1345_vm2, %v2716_v46, 0.0 }
 0x3a2   : > { %1575 = vadd.xlane.f32.xlu1 %v1574_v48  ;;  %v1571_v49 = vsel %vm1345_vm2, %v2718_v47, 0.0 }
 0x3a3   : > { %1572 = vadd.xlane.f32.xlu0 %v1571_v49 }
 0x423   : > { %v1567_v50 = vpop.xlane.xlu0 %1566 }
 0x424   : > { %2719 = vrcp.f32 %v1567_v50 }
 0x427   : > { %v1570_v51 = vpop.xlane.xlu1 %1569 }
 0x428   : > { %2721 = vrcp.f32 %v1570_v51 }
 0x42b   : > { %v1576_v53 = vpop.xlane.xlu1 %1575 }
 0x42c   : > { %2723 = vrcp.f32 %v1576_v53  ;;  %v1573_v54 = vpop.xlane.xlu0 %1572 }
 0x42d   : > { %2725 = vrcp.f32 %v1573_v54 }
 0x431   : > { %v2720_v57 = vpop.eup %2719 }
 0x432   : > { %v1581_v61 = vmul.f32 %v2720_v57, %v2712_v43 }
 0x434   : > { %v1585_v62 = vpack.c.bf16 %v1581_v61, %v1581_v61 }
 0x435   : > { %v2722_v63 = vpop.eup %2721 }
 0x436   : > { %2561 = vmatmul.mubr.msk.bf16.vlgmr.msra.gmra.mxu0 %vm1345_vm2, %v1585_v62  ;;  %v1582_v3 = vmul.f32 %v2722_v63, %v2714_v45 }
 0x437   : > { %2571 = vmatpush3.bf16.msra.mxu0 %v1690_v2  ;;  %2572 = vmatprep.mubr.msk.bf16.mxu0 %vm2796_vm1, %v2795_v9 }
 0x438   : > { %v1586_v60 = vpack.c.bf16 %v1582_v3, %v1582_v3  ;;  %2582 = vmatprep.subr.bf16.mxu0 %v2795_v9 }
 0x439   : > { %v2724_v4 = vpop.eup %2723 }
 0x43a   : > { %v2726_v5 = vpop.eup %2725  ;;  %2567 = vmatmul.mubr.msk.bf16.vlgmr.msra.gmra.mxu1 %vm1345_vm2, %v1586_v60  ;;  %v1584_v8 = vmul.f32 %v2724_v4, %v2716_v46 }
 0x43b   : > { %2577 = vmatpush3.bf16.msra.mxu1 %v1736_v38  ;;  %v1583_v7 = vmul.f32 %v2726_v5, %v2718_v47  ;;  %2578 = vmatprep.mubr.msk.bf16.mxu1 %vm2796_vm1, %v2795_v9 }
 0x43c   : > { %2588 = vmatprep.subr.bf16.mxu1 %v2795_v9  ;;  %v1588_v12 = vpack.c.bf16 %v1584_v8, %v1584_v8  ;;  %v2699_v8 = vld [vmem:[%s3356_s13 + $0x8] sm:$0xff]  }
 0x43d   : > { %v1587_v10 = vpack.c.bf16 %v1583_v7, %v1583_v7 }
 0x43f   : > { %2573 = vmatmul.mubr.msk.bf16.vlgmr.msra.gmra.mxu0 %vm1345_vm2, %v1587_v10 }
 0x440   : > { %2583 = vmatpush3.bf16.msra.mxu0 %v1790_v11  ;;  %2584 = vmatprep.mubr.msk.bf16.mxu0 %vm2796_vm1, %v2795_v9 }
 0x441   : > { %2594 = vmatprep.subr.bf16.mxu0 %v2795_v9 }
 0x442   : > { %2579 = vmatmul.mubr.msk.bf16.vlgmr.msra.gmra.mxu1 %vm1345_vm2, %v1588_v12 }
 0x443   : > { %2590 = vmatprep.mubr.msk.bf16.mxu1 %vm2796_vm1, %v2795_v9  ;;  %2589 = vmatpush3.bf16.msra.mxu1 %v1836_v14  ;;  %v2346_v14 = vld [vmem:[%s3354_s11] ss:$0 sm:$0xff] }
 0x444   : > { %2600 = vmatprep.subr.bf16.mxu1 %v2795_v9 }
 0x4f6   : > { %v1634_v16 = vpop.f32.mrf.mxu0 }
 0x4f7   : > { %v1778_v17 = vpack.c.bf16 %v1634_v16, %v1634_v16  ;;  %v2347_v16 = vld [vmem:[%s3355_s12] ss:$0 sm:$0xff] }
 0x4f8   : > { %v2562_v19 = vpop.f32.mrf.mxu0 }
 0x4f9   : > { %2585 = vmatmul.mubr.msk.bf16.vlgmr.msra.gmra.mxu0 %vm1345_vm2, %v1778_v17 }
 0x4fa   : > { %v1637_v21 = vpop.f32.mrf.mxu0  ;;  %v1680_v22 = vpop.f32.mrf.mxu1  ;;  %2595 = vmatpush3.bf16.msra.mxu0 %v1882_v18  ;;  %2596 = vmatprep.mubr.msk.bf16.mxu0 %vm2796_vm1, %v2795_v9 }
 0x4fb   : > { %v1779_v23 = vpack.c.bf16 %v1680_v22, %v1680_v22  ;;  %2606 = vmatprep.subr.bf16.mxu0 %v2795_v9  ;;  %v2702_v21 = vld [vmem:[%s3358_s15 + $0x30] sm:$0xff]   ;;  %v2703_v22 = vld [vmem:[%s3358_s15 + $0x28] sm:$0xff]  }
 0x4fc   : > { %v2563_v25 = vpop.f32.mrf.mxu0  ;;  %v2568_v26 = vpop.f32.mrf.mxu1 }
 0x4fd   : > { %2591 = vmatmul.mubr.msk.bf16.vlgmr.msra.gmra.mxu1 %vm1345_vm2, %v1779_v23  ;;  %v2704_v23 = vld [vmem:[%s3358_s15 + $0x20] sm:$0xff]   ;;  %v2706_v25 = vld [vmem:[%s3358_s15 + $0x10] sm:$0xff]   ;;  %v2707_v26 = vld [vmem:[%s3358_s15 + $0x8] sm:$0xff]  }
 0x4fe   : > { %v1683_v27 = vpop.f32.mrf.mxu1  ;;  %2601 = vmatpush3.bf16.msra.mxu1 %v1928_v24  ;;  %2602 = vmatprep.mubr.msk.bf16.mxu1 %vm2796_vm1, %v2795_v9  ;;  %v2705_v24 = vld [vmem:[%s3358_s15 + $0x18] sm:$0xff]  }
 0x4ff   : > { %v1726_v28 = vpop.f32.mrf.mxu0  ;;  %2614 = vmatprep.subr.bf16.mxu1 %v2795_v9  ;;  %v2708_v27 = vld [vmem:[%s3358_s15] sm:$0xff]  }
 0x500   : > { %v1780_v29 = vpack.c.bf16 %v1726_v28, %v1726_v28  ;;  %v2569_v30 = vpop.f32.mrf.mxu1  ;;  %v2348_v28 = vld [vmem:[%s3357_s14] ss:$0 sm:$0xff] }
 0x501   : > { %v2574_v31 = vpop.f32.mrf.mxu0 }
 0x502   : > { %2597 = vmatmul.mubr.msk.bf16.vlgmr.msra.gmra.mxu0 %vm1345_vm2, %v1780_v29  ;;  %v1772_v32 = vpop.f32.mrf.mxu1 }
 0x503   : > { %v1729_v33 = vpop.f32.mrf.mxu0  ;;  %v1781_v34 = vpack.c.bf16 %v1772_v32, %v1772_v32  ;;  %2610 = vmatprep.mubr.msk.bf16.mxu0 %vm2796_vm1, %v2795_v9  ;;  %2607 = vmatpush3.bf16.msra.mxu0 %v2699_v8 }
 0x504   : > { %v2580_v35 = vpop.f32.mrf.mxu1  ;;  %2608 = vmatprep.subr.bf16.mxu0 %v2795_v9 }
 0x505   : > { %v2575_v36 = vpop.f32.mrf.mxu0  ;;  %2603 = vmatmul.mubr.msk.bf16.vlgmr.msra.gmra.mxu1 %vm1345_vm2, %v1781_v34 }
 0x506   : > { %v1775_v37 = vpop.f32.mrf.mxu1  ;;  %2630 = vmatprep.mubr.msk.bf16.mxu1 %vm2796_vm1, %v2795_v9  ;;  %2615 = vmatpush3.bf16.msra.mxu1 %v2701_v20 }
 0x507   : > { %2616 = vmatprep.subr.bf16.mxu1 %v2795_v9 }
 0x508   : > { %v2581_v39 = vpop.f32.mrf.mxu1 }
 0x50a   : > { %2617 = vmatpush3.bf16.msra.mxu1 %v2702_v21 }
 0x50b   : > { %2618 = vmatprep.subr.bf16.mxu1 %v2795_v9 }
 0x50e   : > { %2619 = vmatpush3.bf16.msra.mxu1 %v2703_v22 }
 0x50f   : > { %2620 = vmatprep.subr.bf16.mxu1 %v2795_v9 }
 0x512   : > { %2621 = vmatpush3.bf16.msra.mxu1 %v2704_v23 }
 0x513   : > { %2622 = vmatprep.subr.bf16.mxu1 %v2795_v9 }
 0x516   : > { %2623 = vmatpush3.bf16.msra.mxu1 %v2705_v24 }
 0x517   : > { %2624 = vmatprep.subr.bf16.mxu1 %v2795_v9 }
 0x51a   : > { %2625 = vmatpush3.bf16.msra.mxu1 %v2706_v25 }
 0x51b   : > { %2626 = vmatprep.subr.bf16.mxu1 %v2795_v9 }
 0x51e   : > { %2627 = vmatpush3.bf16.msra.mxu1 %v2707_v26 }
 0x51f   : > { %2628 = vmatprep.subr.bf16.mxu1 %v2795_v9 }
 0x522   : > { %2629 = vmatpush3.bf16.msra.mxu1 %v2708_v27 }
 0x5b9   : > { %v1826_v40 = vpop.f32.mrf.mxu0 }
 0x5ba   : > { %v1970_v48 = vsel %vm548_vm0, %v1826_v40, 0.0 }
 0x5bb   : > { %v2586_v41 = vpop.f32.mrf.mxu0 }
 0x5bc   : > { %v2353_v41 = vld [vmem:[%s3359_s16] ss:$0 sm:$0xff] }
 0x5bd   : > { %v1829_v43 = vpop.f32.mrf.mxu0  ;;  %v1872_v44 = vpop.f32.mrf.mxu1 }
 0x5be   : > { %v1971_v46 = vsel %vm548_vm0, %v1872_v44, 0.0 }
 0x5bf   : > { %v2587_v45 = vpop.f32.mrf.mxu0  ;;  %v2592_v42 = vpop.f32.mrf.mxu1  ;;  %v1972_v50 = vadd.f32 %v1971_v46, %v1970_v48 }
 0x5c1   : > { %v1875_v47 = vpop.f32.mrf.mxu1 }
 0x5c2   : > { %v1918_v49 = vpop.f32.mrf.mxu0 }
 0x5c3   : > { %v1973_v51 = vsel %vm548_vm0, %v1918_v49, 0.0  ;;  %v2593_v52 = vpop.f32.mrf.mxu1 }
 0x5c4   : > { %v2598_v53 = vpop.f32.mrf.mxu0  ;;  %v1974_v54 = vadd.f32 %v1973_v51, %v1972_v50 }
 0x5c5   : > { %v1964_v55 = vpop.f32.mrf.mxu1 }
 0x5c6   : > { %v1921_v56 = vpop.f32.mrf.mxu0  ;;  %v1975_v57 = vsel %vm548_vm0, %v1964_v55, 0.0 }
 0x5c7   : > { %v1976_v59 = vadd.f32 %v1975_v57, %v1974_v54  ;;  %v2604_v61 = vpop.f32.mrf.mxu1 }
 0x5c8   : > { %v2599_v62 = vpop.f32.mrf.mxu0 }
 0x5c9   : > { %v1984_v63 = vadd.f32 %v2345_v58, %v1976_v59  ;;  %v1967_v1 = vpop.f32.mrf.mxu1 }
 0x5cb   : > { %v2605_v2 = vpop.f32.mrf.mxu1  ;;  %v3238_v3 = vadd.f32 %v1984_v63, %v2941_v0  ;;  %v2700_v0 = vld [vmem:[%s3356_s13] sm:$0xff]  }
 0x5cc   : > { %2609 = vmatpush3.bf16.msra.mxu0 %v2700_v0 }
 0x5cd   : > { %v1988_v60 = vsel %vm548_vm0, %v3238_v3, 0.0 }
 0x5ce   : > { %1989 = vadd.xlane.f32.xlu0 %v1988_v60 }
 0x657   : > { %v1990_v4 = vpop.xlane.xlu0 %1989 }
 0x658   : > { %v1991_v5 = vmul.f32 0.03125, %v1990_v4 }
 0x65a   : > { %v1992_v38 = vsub.f32 %v3238_v3, %v1991_v5 }
 0x65c   : > { %v1993_v6 = vmul.f32 %v1992_v38, %v1992_v38 }
 0x65e   : > { %v1994_v7 = vsel %vm548_vm0, %v1993_v6, 0.0 }
 0x65f   : > { %1995 = vadd.xlane.f32.xlu1 %v1994_v7 }
 0x6e8   : > { %v1996_v10 = vpop.xlane.xlu1 %1995 }
 0x6e9   : > { %v1997_v11 = vmul.f32 0.03125, %v1996_v10 }
 0x6eb   : > { %v1998_v12 = vadd.f32 1e-05, %v1997_v11 }
 0x6ed   : > { %2727 = vrsqrt.f32 %v1998_v12 }
 0x6fa   : > { %v2728_v13 = vpop.eup %2727 }
 0x6fb   : > { %v2000_v15 = vmul.f32 %v2728_v13, %v1992_v38 }
 0x6fd   : > { %v2007_v17 = vmul.f32 %v2346_v14, %v2000_v15 }
 0x6ff   : > { %v2014_v18 = vadd.f32 %v2347_v16, %v2007_v17 }
 0x701   : > { %v2015_v19 = vpack.c.bf16 %v2014_v18, %v2014_v18 }
 0x703   : > { %2611 = vmatmul.mubr.msk.bf16.vlgmr.msra.gmra.mxu0 %vm548_vm0, %v2015_v19 }
 0x7c3   : > { %v2076_v29 = vpop.f32.mrf.mxu0 }
 0x7c4   : > { %v2077_v30 = vadd.f32 %v2348_v28, %v2076_v29 }
 0x7c5   : > { %v2612_v31 = vpop.f32.mrf.mxu0 }
 0x7c6   : > { %v2352_v32 = vmul.f32 -1.702, %v2077_v30 }
 0x7c7   : > { %v2079_v33 = vpop.f32.mrf.mxu0 }
 0x7c8   : > { %v2084_v34 = vmul.f32 1.442695, %v2352_v32 }
 0x7c9   : > { %v2613_v35 = vpop.f32.mrf.mxu0 }
 0x7ca   : > { %2729 = vpow2.f32 %v2084_v34 }
 0x7d7   : > { %v2730_v9 = vpop.eup %2729 }
 0x7d8   : > { %v2086_v36 = vadd.f32 1.0, %v2730_v9 }
 0x7da   : > { %2731 = vrcp.f32 %v2086_v36 }
 0x7e7   : > { %v2732_v37 = vpop.eup %2731 }
 0x7e8   : > { %v2089_v39 = vmul.f32 %v2732_v37, %v2077_v30 }
 0x7ea   : > { %v2090_v40 = vpack.c.bf16 %v2089_v39, %v2089_v39 }
 0x7ec   : > { %2631 = vmatmul.mubr.bf16.vlgmr.msra.gmra.mxu1 %v2090_v40 }
 0x8ac   : > { %v2196_v43 = vpop.f32.mrf.mxu1 }
 0x8ad   : > { %v2197_v44 = vadd.f32 %v2353_v41, %v2196_v43 }
 0x8ae   : > { %v2632_v45 = vpop.f32.mrf.mxu1 }
 0x8af   : > { %v2202_v42 = vadd.f32 %v2197_v44, %v3238_v3 }
 0x8b0   : > { %v2199_v46 = vpop.f32.mrf.mxu1 }
 0x8b1   : > { %2203 = vst.msk [vmem:[%s539_s22] sm:$0xff] %vm548_vm0, %v2202_v42 }
 0x8b2   : > { %v2633_v47 = vpop.f32.mrf.mxu1 }
 0x8b3   : > { %2746 = shalt.err (!%p2743_p3)
}
 0x8b4   : > { %s2747_s22 = scalar_lea.hbm %s3301_s2, 128  ;;  %s2751_s0 = scalar_lea.hbm %s3360_s17, 256 }
 0x8b5   : > { %p2748_p4 = scmp.ne.s32.totalorder %s3301_s2, %s2747_s22  ;;  %p2752_p9 = scmp.lt.s32.totalorder %s3301_s2, %s3360_s17 }
 0x8b6   : > { %p2753_p10 = scmp.lt.s32.totalorder %s2751_s0, %s2747_s22 }
 0x8b7   : > { %p2749_p7 = pnand %p2748_p4, %p2926_p5 }
 0x8b8   : > { %p2754_p11 = por %p2753_p10, %p2752_p9 }
 0x8b9   : > { %p2750_p8 = pneg %p2749_p7 }
 0x8bb   : > { %p2755_p12 = pnand %p2754_p11, %p2750_p8 }
 0x8bd   : > { %2758 = shalt.err (!%p2755_p12)
}
 0x8be   : > { %2634 = dma.vmem_to_hbm [thread:$0]  (%p2926_p5), %s3303_s29, 128, %s3301_s2, %s2205_s28  }
 0x8bf PF: > { %p2640_p13 = scmp.ge.s32.totalorder %s2793_s27, 2  ;;  %s2230_s19 = sand.u32 1, %s2781_s24  }
 0x8c0   : > { %s2231_s3 = scalar_lea.sflag [#allocation3], %s2230_s19 }
 0x8c1   : > { %p2637_p0 = pnand %p2640_p13, %p2930_p6 }
 0x8c3   : > { %p2638_p1 = pneg %p2637_p0 }
 0x8c5   : > { %2776 = dma.done.wait (%p2638_p1), %s2231_s3, 128  }
 0x8c6   : > { %2778 = vsyncadd (%p2638_p1), %s2231_s3, 4294967168  ;;  %s3377_s27 = sld [smem:[#allocation6_spill]]  ;;  %s3380_s24 = smov %s2785_s25 }
 0x8c7   : > { %s3378_s21 = sld [smem:[#allocation5_spill]] }
 0x8c8   : > { %s3379_s26 = sld [smem:[#allocation7_spill]] }
 0x8cc   : > { %p27_p2 = scmp.ge.s32.totalorder %s3377_s27, 4  }
 0x8cd   : > { %s3381_s25 = smov %s3378_s21 }
 0x8ce   :  { %29 = sbr.rel (!%p27_p2) target bundleno = 8 (0x8), region = 123 }
 0x8d3   :  { %2236 = vsyncpa [#allocation3], 1 }
 0x8d4   :  { %2238 = vsyncpa [#allocation3 + $0x1], 1 }

// kernel: tpu_custom_call.1
= control target key start
LH: loop header
LB: loop body
LE: loop exit
PB: predicated region body
PF: predicated region fallthrough
CT: control target
= control target key end

     0   :  { %s3343_s0 = inlined_call_operand.vmem [shape: f32[2,8,32], index: 0, kind: input, shape index: {}]   ;;  %s3344_s1 = inlined_call_operand.vmem [shape: f32[1,32], index: 1, kind: input, shape index: {}]   ;;  %s3345_s2 = inlined_call_operand.vmem [shape: f32[1,32], index: 2, kind: input, shape index: {}]   ;;  %s3346_s3 = inlined_call_operand.vmem [shape: bf16[4,32,8], index: 3, kind: input, shape index: {}]   ;;  %s3347_s4 = inlined_call_operand.vmem [shape: f32[4,1,8], index: 4, kind: input, shape index: {}]   ;;  %s3348_s5 = inlined_call_operand.vmem [shape: bf16[4,32,8], index: 5, kind: input, shape index: {}]   ;;  %s3349_s6 = inlined_call_operand.vmem [shape: f32[4,1,8], index: 6, kind: input, shape index: {}]   ;;  %s3350_s7 = inlined_call_operand.vmem [shape: bf16[4,32,8], index: 7, kind: input, shape index: {}]   ;;  %s3351_s8 = inlined_call_operand.vmem [shape: f32[4,1,8], index: 8, kind: input, shape index: {}]   ;;  %s3352_s9 = inlined_call_operand.vmem [shape: bf16[4,8,32], index: 9, kind: input, shape index: {}]   ;;  %s3353_s10 = inlined_call_operand.vmem [shape: f32[1,32], index: 10, kind: input, shape index: {}]   ;;  %s3354_s11 = inlined_call_operand.vmem [shape: f32[1,32], index: 11, kind: input, shape index: {}]   ;;  %s3355_s12 = inlined_call_operand.vmem [shape: f32[1,32], index: 12, kind: input, shape index: {}]   ;;  %s3356_s13 = inlined_call_operand.vmem [shape: bf16[32,128], index: 13, kind: input, shape index: {}]   ;;  %s3357_s14 = inlined_call_operand.vmem [shape: f32[1,128], index: 14, kind: input, shape index: {}]   ;;  %s3358_s15 = inlined_call_operand.vmem [shape: bf16[128,32], index: 15, kind: input, shape index: {}]   ;;  %s3359_s16 = inlined_call_operand.vmem [shape: f32[1,32], index: 16, kind: input, shape index: {}]   ;;  %s3360_s17 = inlined_call_operand.hbm [shape: f32[2,8,32], index: 17, kind: output, shape index: {}]  }
   0x1   :  { %3364 = sst [smem:[#allocation8_spill]] %s3343_s0 }
   0x2   :  { %3365 = sst [smem:[#allocation9_spill]] %s3344_s1 }
   0x3   :  { %3366 = sst [smem:[#allocation10_spill]] %s3345_s2 }
   0x4   :  { %3367 = sst [smem:[#allocation11_spill]] %s3346_s3 }
   0x5   :  { %22 = vsyncpa [#allocation3], 0 }
   0x6   :  { %24 = vsyncpa [#allocation3 + $0x1], 0  ;;  %s2888_s24 = smov 0   ;;  %s2890_s25 = smov 0  }
   0x7   :  { %s2892_s26 = smov 0   ;;  %s2894_s27 = smov 0  }
   0x8 LB: > { %3368 = sst [smem:[#allocation5_spill]] %s2789_s26  ;;  %s2909_s28 = sadd.s32 4294967295, %s2793_s27   ;;  %s2793_s27 = sphi %s2894_s27, %s3377_s27   ;;  %s2789_s26 = sphi %s2892_s26, %s3379_s26   ;;  %s2785_s25 = sphi %s2890_s25, %s3381_s25   ;;  %s2781_s24 = sphi %s2888_s24, %s3380_s24  }
   0x9   : > { %s2277_s29 = sadd.s32 4294967294, %s2793_s27   ;;  %s2913_s0 = sadd.s32 1, %s2793_s27  }
   0xa   : > { %3369 = sst [smem:[#allocation6_spill]] %s2913_s0  ;;  %s399_s30 = sadd.s32 1, %s2789_s26 }
   0xb   : > { %s396_s18 = ssub.s32 %s2793_s27, %s2913_s0  ;;  %p409_p0 = scmp.ne.s32.totalorder %s2789_s26, %s2785_s25 }
   0xc   : > { %p397_p1 = scmp.eq.s32.totalorder %s396_s18, 0  ;;  %p410_p2 = scmp.eq.s32.totalorder %s2909_s28, 1 }
   0xd   : > { %p415_p3 = scmp.ne.s32.totalorder %s2785_s25, %s2781_s24  ;;  %p416_p4 = scmp.eq.s32.totalorder %s2277_s29, 1 }
   0xe   : > { %s2924_s19 = scalar_select %p397_p1, %s2789_s26, %s399_s30  }
   0xf   : > { %p2926_p5 = por %p410_p2, %p409_p0  ;;  %p2930_p6 = por %p416_p4, %p415_p3 }
  0x10   : > { %3370 = sst [smem:[#allocation7_spill]] %s2924_s19  ;;  %p2280_p7 = scmp.ge.s32.totalorder %s2793_s27, 1 }
  0x11   : > { %p489_p8 = scmp.lt.s32.totalorder %s2793_s27, 3 }
  0x13   : > { %p490_p9 = pnand %p2280_p7, %p489_p8 }
  0x14   : > { %p540_p10 = scmp.lt.s32.totalorder (!%p490_p9), %s2909_s28, 1  ;;  %s3373_s30 = sld [smem:[#allocation8_spill]] (!%p490_p9) }
  0x15   : > { %493 = sbr.rel (%p490_p9) target bundleno = 2239 (0x8bf), region = 88  ;;  %s3374_s3 = sld [smem:[#allocation11_spill]] (!%p490_p9) }
  0x16   : > { %s3376_s2 = sld [smem:[#allocation10_spill]] (!%p490_p9)  ;;  %s2363_s23 = sshll.u32 (!%p490_p9), %s2909_s28, 7 }
  0x1a   : > { %s541_s21 = scalar_select %p540_p10, %s2909_s28, 1  ;;  %vm548_vm0 = vcmask 261120   ;;  %v2795_v9 = vmov 0.0   ;;  %vm2796_vm1 = vmmov 0   ;;  %v2680_v22 = vld [vmem:[%s3348_s5 + $0x18] sm:$0xff]   ;;  %v2682_v25 = vld [vmem:[%s3348_s5 + $0x10] sm:$0xff]  }
  0x1b   : > { %v2675_v7 = vld [vmem:[%s3374_s3 + $0x8] sm:$0xff]   ;;  %v2676_v8 = vld [vmem:[%s3374_s3 + $0x38] sm:$0xff]   ;;  %2438 = vmatprep.subr.bf16.mxu0 %v2795_v9  ;;  %2462 = vmatprep.subr.bf16.mxu1 %v2795_v9  ;;  %v2677_v10 = vld [vmem:[%s3374_s3] sm:$0xff]   ;;  %vm1345_vm2 = vcmask 64512   ;;  %vm1596_vm3 = vcmask 1043456  }
  0x1c   : > { %s2282_s22 = sshll.u32 %s541_s21, 3  ;;  %2439 = vmatpush3.bf16.msra.mxu0 %v2675_v7  ;;  %2463 = vmatpush3.bf16.msra.mxu1 %v2676_v8  ;;  %v2678_v11 = vld [vmem:[%s3374_s3 + $0x30] sm:$0xff]   ;;  %v2284_v18 = vld [vmem:[%s3376_s2] ss:$0 sm:$0xff]  ;;  %v2679_v21 = vld [vmem:[%s3374_s3 + $0x18] sm:$0xff]   ;;  %s3301_s2 = scalar_lea.hbm %s3360_s17, %s2363_s23 }
  0x1d   : > { %s543_s18 = scalar_lea.vmem %s3373_s30, %s2282_s22  ;;  %2440 = vmatprep.subr.bf16.mxu0 %v2795_v9  ;;  %2464 = vmatprep.subr.bf16.mxu1 %v2795_v9  ;;  %s3375_s22 = sld [smem:[#allocation9_spill]]  ;;  %v2681_v24 = vld [vmem:[%s3374_s3 + $0x10] sm:$0xff]   ;;  %v2683_v26 = vld [vmem:[%s3374_s3 + $0x28] sm:$0xff]   ;;  %v2684_v27 = vld [vmem:[%s3348_s5 + $0x38] sm:$0xff]  }
  0x1e   : > { %v2941_v0 = vld [vmem:[%s543_s18] sm:$0xff]  ;;  %2442 = vmatprep.mubr.msk.bf16.mxu0 %vm2796_vm1, %v2795_v9  ;;  %2466 = vmatprep.mubr.msk.bf16.mxu1 %vm2796_vm1, %v2795_v9  ;;  %v2686_v29 = vld [vmem:[%s3348_s5 + $0x30] sm:$0xff]   ;;  %v2687_v30 = vld [vmem:[%s3348_s5 + $0x8] sm:$0xff]   ;;  %s537_s30 = sand.u32 1, %s2785_s25   ;;  %s2797_s18 = smov [#allocation2]  }
  0x1f   : > { %v549_v1 = vsel %vm548_vm0, %v2941_v0, 0.0  ;;  %v2685_v28 = vld [vmem:[%s3374_s3 + $0x20] sm:$0xff]   ;;  %v2688_v31 = vld [vmem:[%s3350_s7 + $0x18] sm:$0xff]   ;;  %v2690_v33 = vld [vmem:[%s3350_s7 + $0x10] sm:$0xff]   ;;  %s2281_s19 = sshll.u32 %s537_s30, 3  ;;  %s2205_s28 = scalar_lea.sflag [#allocation3], %s537_s30 }
  0x20   : > { %550 = vadd.xlane.f32.xlu0 %v549_v1  ;;  %2441 = vmatpush3.bf16.msra.mxu0 %v2677_v10  ;;  %v2689_v32 = vld [vmem:[%s3348_s5] sm:$0xff]   ;;  %v2691_v34 = vld [vmem:[%s3348_s5 + $0x28] sm:$0xff]   ;;  %v2692_v35 = vld [vmem:[%s3350_s7 + $0x38] sm:$0xff]   ;;  %s2737_s21 = sshll.u32 %s2797_s18, 4  ;;  %s2738_s21 = int_to_ptr.vmem [resolvable:$false] %s2737_s21 }
  0x21   : > { %2465 = vmatpush3.bf16.msra.mxu1 %v2678_v11  ;;  %2446 = vmatprep.subr.bf16.mxu0 %v2795_v9  ;;  %v2693_v36 = vld [vmem:[%s3348_s5 + $0x20] sm:$0xff]   ;;  %v2694_v37 = vld [vmem:[%s3350_s7 + $0x30] sm:$0xff]   ;;  %v2695_v38 = vld [vmem:[%s3350_s7 + $0x8] sm:$0xff]   ;;  %s2739_s23 = scalar_lea.vmem %s2738_s21, 256 }
  0x22   : > { %2478 = vmatprep.subr.bf16.mxu1 %v2795_v9  ;;  %v2696_v39 = vld [vmem:[%s3350_s7] sm:$0xff]   ;;  %v2697_v40 = vld [vmem:[%s3350_s7 + $0x28] sm:$0xff]  }
  0x23   : > { %v2283_v16 = vld [vmem:[%s3375_s22] ss:$0 sm:$0xff]  ;;  %v2302_v50 = vld [vmem:[%s3349_s6 + $0x1] ss:$0 sm:$0xff]  ;;  %v2304_v63 = vld [vmem:[%s3349_s6 + $0x3] ss:$0 sm:$0xff] }
  0x24   : > { %v2698_v41 = vld [vmem:[%s3350_s7 + $0x20] sm:$0xff]   ;;  %s539_s22 = scalar_lea.vmem [#allocation2], %s2281_s19 }
  0x25   : > { %v2286_v57 = vld [vmem:[%s3347_s4 + $0x1] ss:$0 sm:$0xff]  ;;  %v2288_v10 = vld [vmem:[%s3347_s4 + $0x3] ss:$0 sm:$0xff]  ;;  %s2218_s29 = sshll.u32 %s539_s22, 4  ;;  %s3303_s29 = int_to_ptr.vmem [resolvable:$true] %s2218_s29 }
  0x26   : > { %s2733_s19 = scalar_lea.vmem %s3303_s29, 128  ;;  %p2740_p0 = scmp.lt.s32.totalorder %s3303_s29, %s2738_s21 }
  0x27   : > { %p2734_p11 = scmp.ne.s32.totalorder %s3303_s29, %s2733_s19  ;;  %p2741_p1 = scmp.lt.s32.totalorder %s2739_s23, %s2733_s19 }
  0x29   : > { %p2735_p12 = pnand %p2734_p11, %p2926_p5  ;;  %p2742_p2 = por %p2741_p1, %p2740_p0 }
  0x2b   : > { %p2736_p13 = pneg %p2735_p12 }
  0x2d   : > { %p2743_p3 = pnand %p2742_p2, %p2736_p13 }
  0xa9   : > { %v551_v2 = vpop.xlane.xlu0 %550 }
  0xaa   : > { %v553_v3 = vmul.f32 0.03125, %v551_v2 }
  0xac   : > { %v554_v4 = vsub.f32 %v2941_v0, %v553_v3 }
  0xae   : > { %v555_v5 = vmul.f32 %v554_v4, %v554_v4 }
  0xb0   : > { %v556_v6 = vsel %vm548_vm0, %v555_v5, 0.0 }
  0xb1   : > { %557 = vadd.xlane.f32.xlu0 %v556_v6 }
 0x13a   : > { %v558_v12 = vpop.xlane.xlu0 %557 }
 0x13b   : > { %v559_v13 = vmul.f32 0.03125, %v558_v12 }
 0x13d   : > { %v560_v14 = vadd.f32 1e-05, %v559_v13 }
 0x13f   : > { %2709 = vrsqrt.f32 %v560_v14 }
 0x14c   : > { %v2710_v15 = vpop.eup %2709 }
 0x14d   : > { %v562_v17 = vmul.f32 %v2710_v15, %v554_v4 }
 0x14f   : > { %v569_v19 = vmul.f32 %v2283_v16, %v562_v17  ;;  %v2301_v16 = vld [vmem:[%s3349_s6] ss:$0 sm:$0xff]  ;;  %v2318_v17 = vld [vmem:[%s3351_s8 + $0x1] ss:$0 sm:$0xff] }
 0x151   : > { %v576_v20 = vadd.f32 %v2284_v18, %v569_v19 }
 0x153   : > { %v2981_v23 = vpack.c.bf16 %v576_v20, %v576_v20 }
 0x155   : > { %2443 = vmatmul.mubr.msk.bf16.vlgmr.msra.gmra.mxu0 %vm548_vm0, %v2981_v23  ;;  %2467 = vmatmul.mubr.msk.bf16.vlgmr.msra.gmra.mxu1 %vm548_vm0, %v2981_v23 }
 0x156   : > { %2447 = vmatpush3.bf16.msra.mxu0 %v2679_v21  ;;  %2479 = vmatpush3.bf16.msra.mxu1 %v2680_v22 }
 0x157   : > { %2448 = vmatprep.subr.bf16.mxu0 %v2795_v9  ;;  %2480 = vmatprep.subr.bf16.mxu1 %v2795_v9 }
 0x158   : > { %2450 = vmatprep.mubr.msk.bf16.mxu0 %vm2796_vm1, %v2795_v9  ;;  %2482 = vmatprep.mubr.msk.bf16.mxu1 %vm2796_vm1, %v2795_v9 }
 0x15a   : > { %2449 = vmatpush3.bf16.msra.mxu0 %v2681_v24  ;;  %2481 = vmatpush3.bf16.msra.mxu1 %v2682_v25 }
 0x15b   : > { %2454 = vmatprep.subr.bf16.mxu0 %v2795_v9  ;;  %2494 = vmatprep.subr.bf16.mxu1 %v2795_v9 }
 0x15d   : > { %2451 = vmatmul.mubr.msk.bf16.vlgmr.msra.gmra.mxu0 %vm548_vm0, %v2981_v23  ;;  %2483 = vmatmul.mubr.msk.bf16.vlgmr.msra.gmra.mxu1 %vm548_vm0, %v2981_v23 }
 0x15e   : > { %2455 = vmatpush3.bf16.msra.mxu0 %v2683_v26  ;;  %2495 = vmatpush3.bf16.msra.mxu1 %v2684_v27 }
 0x15f   : > { %2456 = vmatprep.subr.bf16.mxu0 %v2795_v9  ;;  %2496 = vmatprep.subr.bf16.mxu1 %v2795_v9 }
 0x160   : > { %2458 = vmatprep.mubr.msk.bf16.mxu0 %vm2796_vm1, %v2795_v9  ;;  %2498 = vmatprep.mubr.msk.bf16.mxu1 %vm2796_vm1, %v2795_v9 }
 0x162   : > { %2457 = vmatpush3.bf16.msra.mxu0 %v2685_v28  ;;  %2497 = vmatpush3.bf16.msra.mxu1 %v2686_v29  ;;  %v2285_v28 = vld [vmem:[%s3347_s4] ss:$0 sm:$0xff] }
 0x163   : > { %2470 = vmatprep.subr.bf16.mxu0 %v2795_v9  ;;  %2510 = vmatprep.subr.bf16.mxu1 %v2795_v9 }
 0x165   : > { %2459 = vmatmul.mubr.msk.bf16.vlgmr.msra.gmra.mxu0 %vm548_vm0, %v2981_v23  ;;  %2499 = vmatmul.mubr.msk.bf16.vlgmr.msra.gmra.mxu1 %vm548_vm0, %v2981_v23 }
 0x166   : > { %2471 = vmatpush3.bf16.msra.mxu0 %v2687_v30  ;;  %2511 = vmatpush3.bf16.msra.mxu1 %v2688_v31 }
 0x167   : > { %2472 = vmatprep.subr.bf16.mxu0 %v2795_v9  ;;  %2512 = vmatprep.subr.bf16.mxu1 %v2795_v9 }
 0x168   : > { %2474 = vmatprep.mubr.msk.bf16.mxu0 %vm2796_vm1, %v2795_v9  ;;  %2514 = vmatprep.mubr.msk.bf16.mxu1 %vm2796_vm1, %v2795_v9 }
 0x16a   : > { %2473 = vmatpush3.bf16.msra.mxu0 %v2689_v32  ;;  %2513 = vmatpush3.bf16.msra.mxu1 %v2690_v33 }
 0x16b   : > { %2486 = vmatprep.subr.bf16.mxu0 %v2795_v9  ;;  %2526 = vmatprep.subr.bf16.mxu1 %v2795_v9 }
 0x16d   : > { %2475 = vmatmul.mubr.msk.bf16.vlgmr.msra.gmra.mxu0 %vm548_vm0, %v2981_v23  ;;  %2515 = vmatmul.mubr.msk.bf16.vlgmr.msra.gmra.mxu1 %vm548_vm0, %v2981_v23 }
 0x16e   : > { %2487 = vmatpush3.bf16.msra.mxu0 %v2691_v34  ;;  %2527 = vmatpush3.bf16.msra.mxu1 %v2692_v35  ;;  %v2303_v35 = vld [vmem:[%s3349_s6 + $0x2] ss:$0 sm:$0xff] }
 0x16f   : > { %2488 = vmatprep.subr.bf16.mxu0 %v2795_v9  ;;  %2528 = vmatprep.subr.bf16.mxu1 %v2795_v9 }
 0x170   : > { %2490 = vmatprep.mubr.msk.bf16.mxu0 %vm2796_vm1, %v2795_v9  ;;  %2530 = vmatprep.mubr.msk.bf16.mxu1 %vm2796_vm1, %v2795_v9 }
 0x172   : > { %2489 = vmatpush3.bf16.msra.mxu0 %v2693_v36  ;;  %2529 = vmatpush3.bf16.msra.mxu1 %v2694_v37 }
 0x173   : > { %2502 = vmatprep.subr.bf16.mxu0 %v2795_v9  ;;  %2540 = vmatprep.subr.bf16.mxu1 %v2795_v9 }
 0x175   : > { %2491 = vmatmul.mubr.msk.bf16.vlgmr.msra.gmra.mxu0 %vm548_vm0, %v2981_v23  ;;  %2531 = vmatmul.mubr.msk.bf16.vlgmr.msra.gmra.mxu1 %vm548_vm0, %v2981_v23 }
 0x176   : > { %2503 = vmatpush3.bf16.msra.mxu0 %v2695_v38  ;;  %2506 = vmatprep.mubr.msk.bf16.mxu0 %vm2796_vm1, %v2795_v9 }
 0x177   : > { %2504 = vmatprep.subr.bf16.mxu0 %v2795_v9  ;;  %2542 = vmatprep.mubr.msk.bf16.mxu1 %vm2796_vm1, %v2795_v9 }
 0x17a   : > { %2505 = vmatpush3.bf16.msra.mxu0 %v2696_v39 }
 0x17b   : > { %2518 = vmatprep.subr.bf16.mxu0 %v2795_v9 }
 0x17d   : > { %2507 = vmatmul.mubr.msk.bf16.vlgmr.msra.gmra.mxu0 %vm548_vm0, %v2981_v23 }
 0x17e   : > { %2519 = vmatpush3.bf16.msra.mxu0 %v2697_v40  ;;  %2522 = vmatprep.mubr.msk.bf16.mxu0 %vm2796_vm1, %v2795_v9 }
 0x17f   : > { %2520 = vmatprep.subr.bf16.mxu0 %v2795_v9 }
 0x182   : > { %2521 = vmatpush3.bf16.msra.mxu0 %v2698_v41 }
 0x183   : > { %2534 = vmatprep.subr.bf16.mxu0 %v2795_v9 }
 0x185   : > { %2523 = vmatmul.mubr.msk.bf16.vlgmr.msra.gmra.mxu0 %vm548_vm0, %v2981_v23 }
 0x186   : > { %2536 = vmatprep.mubr.msk.bf16.mxu0 %vm2796_vm1, %v2795_v9 }
 0x215   : > { %v3105_v42 = vpop.f32.mrf.mxu0  ;;  %v827_v43 = vpop.f32.mrf.mxu1 }
 0x216   : > { %v828_v18 = vadd.f32 %v2288_v10, %v827_v43  ;;  %v672_v36 = vadd.f32 %v2285_v28, %v3105_v42 }
 0x217   : > { %v2444_v44 = vpop.f32.mrf.mxu0  ;;  %v2468_v45 = vpop.f32.mrf.mxu1 }
 0x218   : > { %v1340_v25 = vpack.c.bf16 %v828_v18, %v828_v18  ;;  %v1337_v43 = vpack.c.bf16 %v672_v36, %v672_v36  ;;  %v2287_v45 = vld [vmem:[%s3347_s4 + $0x2] ss:$0 sm:$0xff] }
 0x219   : > { %v674_v46 = vpop.f32.mrf.mxu0  ;;  %v830_v47 = vpop.f32.mrf.mxu1 }
 0x21b   : > { %v2445_v48 = vpop.f32.mrf.mxu0  ;;  %v2469_v49 = vpop.f32.mrf.mxu1 }
 0x21d   : > { %v723_v51 = vpop.f32.mrf.mxu0  ;;  %v975_v52 = vpop.f32.mrf.mxu1 }
 0x21e   : > { %v976_v53 = vadd.f32 %v2302_v50, %v975_v52  ;;  %v724_v1 = vadd.f32 %v2286_v57, %v723_v51  ;;  %v2317_v50 = vld [vmem:[%s3351_s8] ss:$0 sm:$0xff] }
 0x21f   : > { %v2452_v54 = vpop.f32.mrf.mxu0  ;;  %v2484_v55 = vpop.f32.mrf.mxu1 }
 0x220   : > { %v1342_v56 = vpack.c.bf16 %v976_v53, %v976_v53  ;;  %v1338_v7 = vpack.c.bf16 %v724_v1, %v724_v1 }
 0x221   : > { %v726_v58 = vpop.f32.mrf.mxu0  ;;  %v978_v59 = vpop.f32.mrf.mxu1 }
 0x222   : > { %v1396_v60 = vsel %vm1345_vm2, %v1342_v56, 0 }
 0x223   : > { %v2453_v61 = vpop.f32.mrf.mxu0  ;;  %v2485_v62 = vpop.f32.mrf.mxu1  ;;  %2541 = vmatpush3.bf16.xpose.msra.mxu1 %v1396_v60 }
 0x224   : > { %2552 = vmatprep.subr.bf16.mxu1 %v2795_v9 }
 0x225   : > { %v775_v2 = vpop.f32.mrf.mxu0  ;;  %v1079_v3 = vpop.f32.mrf.mxu1 }
 0x226   : > { %v1080_v4 = vadd.f32 %v2304_v63, %v1079_v3  ;;  %v776_v51 = vadd.f32 %v2287_v45, %v775_v2 }
 0x227   : > { %v2460_v5 = vpop.f32.mrf.mxu0  ;;  %v2500_v6 = vpop.f32.mrf.mxu1 }
 0x228   : > { %v1344_v8 = vpack.c.bf16 %v1080_v4, %v1080_v4  ;;  %v1339_v55 = vpack.c.bf16 %v776_v51, %v776_v51  ;;  %v1530_v5 = vlaneseq }
 0x229   : > { %v778_v11 = vpop.f32.mrf.mxu0  ;;  %v1082_v12 = vpop.f32.mrf.mxu1 }
 0x22a   : > { %v1488_v13 = vsel %vm1345_vm2, %v1344_v8, 0  ;;  %2543 = vmatmul.mubr.msk.bf16.vlgmr.msra.gmra.mxu1 %vm1345_vm2, %v1338_v7  ;;  %v1531_v8 = vshrl.u32 %v1530_v5, 7  ;;  %v1533_v10 = vand.u32 127, %v1530_v5 }
 0x22b   : > { %v2461_v14 = vpop.f32.mrf.mxu0  ;;  %v2501_v15 = vpop.f32.mrf.mxu1  ;;  %2553 = vmatpush3.bf16.xpose.msra.mxu1 %v1488_v13  ;;  %2554 = vmatprep.mubr.msk.bf16.mxu1 %vm2796_vm1, %v2795_v9 }
 0x22c   : > { %2564 = vmatprep.subr.bf16.mxu1 %v2795_v9  ;;  %vm1534_vm4 = vcmp.gt.s32.totalorder %v1533_v10, %v1531_v8 }
 0x22d   : > { %v923_v19 = vpop.f32.mrf.mxu0  ;;  %v1227_v20 = vpop.f32.mrf.mxu1 }
 0x22e   : > { %v924_v21 = vadd.f32 %v2301_v16, %v923_v19  ;;  %v1228_v22 = vadd.f32 %v2318_v17, %v1227_v20 }
 0x22f   : > { %v2476_v23 = vpop.f32.mrf.mxu0  ;;  %v2516_v24 = vpop.f32.mrf.mxu1 }
 0x230   : > { %v1341_v26 = vpack.c.bf16 %v924_v21, %v924_v21  ;;  %v1590_v27 = vpack.c.bf16 %v1228_v22, %v1228_v22 }
 0x231   : > { %v926_v29 = vpop.f32.mrf.mxu0  ;;  %v1230_v30 = vpop.f32.mrf.mxu1 }
 0x232   : > { %v1350_v31 = vsel %vm1345_vm2, %v1341_v26, 0  ;;  %v1644_v32 = vsel %vm1596_vm3, %v1590_v27, 0  ;;  %2555 = vmatmul.mubr.msk.bf16.vlgmr.msra.gmra.mxu1 %vm1345_vm2, %v1340_v25 }
 0x233   : > { %v2477_v33 = vpop.f32.mrf.mxu0  ;;  %v2517_v34 = vpop.f32.mrf.mxu1  ;;  %2535 = vmatpush3.bf16.xpose.msra.mxu0 %v1350_v31  ;;  %2565 = vmatpush3.bf16.msra.mxu1 %v1644_v32 }
 0x234   : > { %2546 = vmatprep.subr.bf16.mxu0 %v2795_v9  ;;  %2566 = vmatprep.mubr.msk.bf16.mxu1 %vm2796_vm1, %v2795_v9 }
 0x235   : > { %v1027_v37 = vpop.f32.mrf.mxu0  ;;  %v3145_v38 = vpop.f32.mrf.mxu1  ;;  %2576 = vmatprep.subr.bf16.mxu1 %v2795_v9 }
 0x236   : > { %v1028_v39 = vadd.f32 %v2303_v35, %v1027_v37 }
 0x237   : > { %v2492_v40 = vpop.f32.mrf.mxu0  ;;  %v2532_v41 = vpop.f32.mrf.mxu1 }
 0x238   : > { %v1343_v44 = vpack.c.bf16 %v1028_v39, %v1028_v39 }
 0x239   : > { %v1030_v42 = vpop.f32.mrf.mxu0  ;;  %v1334_v46 = vpop.f32.mrf.mxu1 }
 0x23a   : > { %v1442_v47 = vsel %vm1345_vm2, %v1343_v44, 0  ;;  %2537 = vmatmul.mubr.msk.bf16.vlgmr.msra.gmra.mxu0 %vm1345_vm2, %v1337_v43 }
 0x23b   : > { %v2493_v48 = vpop.f32.mrf.mxu0  ;;  %v2533_v49 = vpop.f32.mrf.mxu1  ;;  %2547 = vmatpush3.bf16.xpose.msra.mxu0 %v1442_v47  ;;  %2548 = vmatprep.mubr.msk.bf16.mxu0 %vm2796_vm1, %v2795_v9 }
 0x23c   : > { %2558 = vmatprep.subr.bf16.mxu0 %v2795_v9 }
 0x23d   : > { %v1175_v52 = vpop.f32.mrf.mxu0 }
 0x23e   : > { %v1176_v53 = vadd.f32 %v2317_v50, %v1175_v52  ;;  %v2319_v52 = vld [vmem:[%s3351_s8 + $0x2] ss:$0 sm:$0xff] }
 0x23f   : > { %v2508_v54 = vpop.f32.mrf.mxu0 }
 0x240   : > { %v1589_v56 = vpack.c.bf16 %v1176_v53, %v1176_v53 }
 0x241   : > { %v1178_v57 = vpop.f32.mrf.mxu0 }
 0x242   : > { %v1598_v58 = vsel %vm1596_vm3, %v1589_v56, 0  ;;  %2549 = vmatmul.mubr.msk.bf16.vlgmr.msra.gmra.mxu0 %vm1345_vm2, %v1339_v55  ;;  %v2320_v56 = vld [vmem:[%s3351_s8 + $0x3] ss:$0 sm:$0xff] }
 0x243   : > { %v2509_v59 = vpop.f32.mrf.mxu0  ;;  %2559 = vmatpush3.bf16.msra.mxu0 %v1598_v58  ;;  %2560 = vmatprep.mubr.msk.bf16.mxu0 %vm2796_vm1, %v2795_v9  ;;  %v1332_v58 = vadd.f32 %v2320_v56, %v3145_v38 }
 0x244   : > { %2570 = vmatprep.subr.bf16.mxu0 %v2795_v9 }
 0x245   : > { %v3164_v60 = vpop.f32.mrf.mxu0 }
 0x246   : > { %v1280_v55 = vadd.f32 %v2319_v52, %v3164_v60 }
 0x247   : > { %v2524_v61 = vpop.f32.mrf.mxu0 }
 0x248   : > { %v1591_v59 = vpack.c.bf16 %v1280_v55, %v1280_v55 }
 0x249   : > { %v1282_v62 = vpop.f32.mrf.mxu0 }
 0x24b   : > { %v2525_v63 = vpop.f32.mrf.mxu0 }
 0x2ea   : > { %v1432_v1 = vpop.f32.mrf.mxu1 }
 0x2eb   : > { %v1538_v17 = vsel %vm1534_vm4, -inf, %v1432_v1  ;;  %v1592_v1 = vpack.c.bf16 %v1332_v58, %v1332_v58  ;;  %v2345_v58 = vld [vmem:[%s3353_s10] ss:$0 sm:$0xff] }
 0x2ec   : > { %v2544_v2 = vpop.f32.mrf.mxu1  ;;  %v1544_v20 = vsel %vm1345_vm2, %v1538_v17, -inf }
 0x2ed   : > { %v1690_v2 = vsel %vm1596_vm3, %v1591_v59, 0  ;;  %v1736_v38 = vsel %vm1596_vm3, %v1592_v1, 0 }
 0x2ee   : > { %v1435_v3 = vpop.f32.mrf.mxu1 }
 0x2f0   : > { %v2545_v4 = vpop.f32.mrf.mxu1 }
 0x2f2   : > { %v1524_v6 = vpop.f32.mrf.mxu1 }
 0x2f3   : > { %v1540_v21 = vsel %vm1534_vm4, -inf, %v1524_v6  ;;  %v1782_v6 = vld [vmem:[%s3352_s9] sm:$0xf] }
 0x2f4   : > { %v2556_v7 = vpop.f32.mrf.mxu1  ;;  %v1550_v25 = vsel %vm1345_vm2, %v1540_v21, -inf }
 0x2f6   : > { %v1527_v11 = vpop.f32.mrf.mxu1 }
 0x2f7   : > { %v1790_v11 = vsel %vm1596_vm3, %v1782_v6, 0 }
 0x2f8   : > { %v2557_v12 = vpop.f32.mrf.mxu1 }
 0x2fa   : > { %v1386_v13 = vpop.f32.mrf.mxu0 }
 0x2fb   : > { %v1537_v14 = vsel %vm1534_vm4, -inf, %v1386_v13  ;;  %v1783_v13 = vld [vmem:[%s3352_s9 + $0x4] sm:$0xf] }
 0x2fc   : > { %v2538_v15 = vpop.f32.mrf.mxu0  ;;  %v1541_v16 = vsel %vm1345_vm2, %v1537_v14, -inf }
 0x2fd   : > { %1542 = vmax.xlane.f32.xlu1 %v1541_v16  ;;  %v1784_v15 = vld [vmem:[%s3352_s9 + $0x8] sm:$0xf] }
 0x2fe   : > { %v1389_v18 = vpop.f32.mrf.mxu0 }
 0x2ff   : > { %v1882_v18 = vsel %vm1596_vm3, %v1784_v15, 0 }
 0x300   : > { %v2539_v19 = vpop.f32.mrf.mxu0 }
 0x301   : > { %1545 = vmax.xlane.f32.xlu1 %v1544_v20  ;;  %v1785_v20 = vld [vmem:[%s3352_s9 + $0xc] sm:$0xf] }
 0x302   : > { %v1478_v22 = vpop.f32.mrf.mxu0 }
 0x303   : > { %v1539_v23 = vsel %vm1534_vm4, -inf, %v1478_v22 }
 0x304   : > { %v2550_v24 = vpop.f32.mrf.mxu0  ;;  %v1547_v26 = vsel %vm1345_vm2, %v1539_v23, -inf }
 0x305   : > { %1551 = vmax.xlane.f32.xlu1 %v1550_v25  ;;  %1548 = vmax.xlane.f32.xlu0 %v1547_v26  ;;  %v1928_v24 = vsel %vm1596_vm3, %v1785_v20, 0  ;;  %v2701_v20 = vld [vmem:[%s3358_s15 + $0x38] sm:$0xff]  }
 0x306   : > { %v1481_v27 = vpop.f32.mrf.mxu0 }
 0x308   : > { %v2551_v28 = vpop.f32.mrf.mxu0 }
 0x386   : > { %v1543_v29 = vpop.xlane.xlu1 %1542 }
 0x387   : > { %v1553_v30 = vsub.f32 %v1537_v14, %v1543_v29  ;;  %v1836_v14 = vsel %vm1596_vm3, %v1783_v13, 0 }
 0x389   : > { %v1557_v31 = vmul.f32 1.442695, %v1553_v30 }
 0x38a   : > { %v1546_v32 = vpop.xlane.xlu1 %1545 }
 0x38b   : > { %2711 = vpow2.f32 %v1557_v31  ;;  %v1554_v33 = vsub.f32 %v1538_v17, %v1546_v32 }
 0x38d   : > { %v1559_v34 = vmul.f32 1.442695, %v1554_v33 }
 0x38e   : > { %v1552_v35 = vpop.xlane.xlu1 %1551  ;;  %v1549_v36 = vpop.xlane.xlu0 %1548 }
 0x38f   : > { %2713 = vpow2.f32 %v1559_v34  ;;  %v1556_v37 = vsub.f32 %v1540_v21, %v1552_v35  ;;  %v1555_v39 = vsub.f32 %v1539_v23, %v1549_v36 }
 0x391   : > { %v1563_v40 = vmul.f32 1.442695, %v1556_v37  ;;  %v1561_v41 = vmul.f32 1.442695, %v1555_v39 }
 0x393   : > { %2715 = vpow2.f32 %v1563_v40 }
 0x394   : > { %2717 = vpow2.f32 %v1561_v41 }
 0x398   : > { %v2712_v43 = vpop.eup %2711 }
 0x399   : > { %v1565_v44 = vsel %vm1345_vm2, %v2712_v43, 0.0 }
 0x39a   : > { %1566 = vadd.xlane.f32.xlu0 %v1565_v44 }
 0x39c   : > { %v2714_v45 = vpop.eup %2713 }
 0x39d   : > { %v1568_v42 = vsel %vm1345_vm2, %v2714_v45, 0.0 }
 0x39e   : > { %1569 = vadd.xlane.f32.xlu1 %v1568_v42 }
 0x3a0   : > { %v2716_v46 = vpop.eup %2715 }
 0x3a1   : > { %v2718_v47 = vpop.eup %2717  ;;  %v1574_v48 = vsel %vm1345_vm2, %v2716_v46, 0.0 }
 0x3a2   : > { %1575 = vadd.xlane.f32.xlu1 %v1574_v48  ;;  %v1571_v49 = vsel %vm1345_vm2, %v2718_v47, 0.0 }
 0x3a3   : > { %1572 = vadd.xlane.f32.xlu0 %v1571_v49 }
 0x423   : > { %v1567_v50 = vpop.xlane.xlu0 %1566 }
 0x424   : > { %2719 = vrcp.f32 %v1567_v50 }
 0x427   : > { %v1570_v51 = vpop.xlane.xlu1 %1569 }
 0x428   : > { %2721 = vrcp.f32 %v1570_v51 }
 0x42b   : > { %v1576_v53 = vpop.xlane.xlu1 %1575 }
 0x42c   : > { %2723 = vrcp.f32 %v1576_v53  ;;  %v1573_v54 = vpop.xlane.xlu0 %1572 }
 0x42d   : > { %2725 = vrcp.f32 %v1573_v54 }
 0x431   : > { %v2720_v57 = vpop.eup %2719 }
 0x432   : > { %v1581_v61 = vmul.f32 %v2720_v57, %v2712_v43 }
 0x434   : > { %v1585_v62 = vpack.c.bf16 %v1581_v61, %v1581_v61 }
 0x435   : > { %v2722_v63 = vpop.eup %2721 }
 0x436   : > { %2561 = vmatmul.mubr.msk.bf16.vlgmr.msra.gmra.mxu0 %vm1345_vm2, %v1585_v62  ;;  %v1582_v3 = vmul.f32 %v2722_v63, %v2714_v45 }
 0x437   : > { %2571 = vmatpush3.bf16.msra.mxu0 %v1690_v2  ;;  %2572 = vmatprep.mubr.msk.bf16.mxu0 %vm2796_vm1, %v2795_v9 }
 0x438   : > { %v1586_v60 = vpack.c.bf16 %v1582_v3, %v1582_v3  ;;  %2582 = vmatprep.subr.bf16.mxu0 %v2795_v9 }
 0x439   : > { %v2724_v4 = vpop.eup %2723 }
 0x43a   : > { %v2726_v5 = vpop.eup %2725  ;;  %2567 = vmatmul.mubr.msk.bf16.vlgmr.msra.gmra.mxu1 %vm1345_vm2, %v1586_v60  ;;  %v1584_v8 = vmul.f32 %v2724_v4, %v2716_v46 }
 0x43b   : > { %2577 = vmatpush3.bf16.msra.mxu1 %v1736_v38  ;;  %v1583_v7 = vmul.f32 %v2726_v5, %v2718_v47  ;;  %2578 = vmatprep.mubr.msk.bf16.mxu1 %vm2796_vm1, %v2795_v9 }
 0x43c   : > { %2588 = vmatprep.subr.bf16.mxu1 %v2795_v9  ;;  %v1588_v12 = vpack.c.bf16 %v1584_v8, %v1584_v8  ;;  %v2699_v8 = vld [vmem:[%s3356_s13 + $0x8] sm:$0xff]  }
 0x43d   : > { %v1587_v10 = vpack.c.bf16 %v1583_v7, %v1583_v7 }
 0x43f   : > { %2573 = vmatmul.mubr.msk.bf16.vlgmr.msra.gmra.mxu0 %vm1345_vm2, %v1587_v10 }
 0x440   : > { %2583 = vmatpush3.bf16.msra.mxu0 %v1790_v11  ;;  %2584 = vmatprep.mubr.msk.bf16.mxu0 %vm2796_vm1, %v2795_v9 }
 0x441   : > { %2594 = vmatprep.subr.bf16.mxu0 %v2795_v9 }
 0x442   : > { %2579 = vmatmul.mubr.msk.bf16.vlgmr.msra.gmra.mxu1 %vm1345_vm2, %v1588_v12 }
 0x443   : > { %2590 = vmatprep.mubr.msk.bf16.mxu1 %vm2796_vm1, %v2795_v9  ;;  %2589 = vmatpush3.bf16.msra.mxu1 %v1836_v14  ;;  %v2346_v14 = vld [vmem:[%s3354_s11] ss:$0 sm:$0xff] }
 0x444   : > { %2600 = vmatprep.subr.bf16.mxu1 %v2795_v9 }
 0x4f6   : > { %v1634_v16 = vpop.f32.mrf.mxu0 }
 0x4f7   : > { %v1778_v17 = vpack.c.bf16 %v1634_v16, %v1634_v16  ;;  %v2347_v16 = vld [vmem:[%s3355_s12] ss:$0 sm:$0xff] }
 0x4f8   : > { %v2562_v19 = vpop.f32.mrf.mxu0 }
 0x4f9   : > { %2585 = vmatmul.mubr.msk.bf16.vlgmr.msra.gmra.mxu0 %vm1345_vm2, %v1778_v17 }
 0x4fa   : > { %v1637_v21 = vpop.f32.mrf.mxu0  ;;  %v1680_v22 = vpop.f32.mrf.mxu1  ;;  %2595 = vmatpush3.bf16.msra.mxu0 %v1882_v18  ;;  %2596 = vmatprep.mubr.msk.bf16.mxu0 %vm2796_vm1, %v2795_v9 }
 0x4fb   : > { %v1779_v23 = vpack.c.bf16 %v1680_v22, %v1680_v22  ;;  %2606 = vmatprep.subr.bf16.mxu0 %v2795_v9  ;;  %v2702_v21 = vld [vmem:[%s3358_s15 + $0x30] sm:$0xff]   ;;  %v2703_v22 = vld [vmem:[%s3358_s15 + $0x28] sm:$0xff]  }
 0x4fc   : > { %v2563_v25 = vpop.f32.mrf.mxu0  ;;  %v2568_v26 = vpop.f32.mrf.mxu1 }
 0x4fd   : > { %2591 = vmatmul.mubr.msk.bf16.vlgmr.msra.gmra.mxu1 %vm1345_vm2, %v1779_v23  ;;  %v2704_v23 = vld [vmem:[%s3358_s15 + $0x20] sm:$0xff]   ;;  %v2706_v25 = vld [vmem:[%s3358_s15 + $0x10] sm:$0xff]   ;;  %v2707_v26 = vld [vmem:[%s3358_s15 + $0x8] sm:$0xff]  }
 0x4fe   : > { %v1683_v27 = vpop.f32.mrf.mxu1  ;;  %2601 = vmatpush3.bf16.msra.mxu1 %v1928_v24  ;;  %2602 = vmatprep.mubr.msk.bf16.mxu1 %vm2796_vm1, %v2795_v9  ;;  %v2705_v24 = vld [vmem:[%s3358_s15 + $0x18] sm:$0xff]  }
 0x4ff   : > { %v1726_v28 = vpop.f32.mrf.mxu0  ;;  %2614 = vmatprep.subr.bf16.mxu1 %v2795_v9  ;;  %v2708_v27 = vld [vmem:[%s3358_s15] sm:$0xff]  }
 0x500   : > { %v1780_v29 = vpack.c.bf16 %v1726_v28, %v1726_v28  ;;  %v2569_v30 = vpop.f32.mrf.mxu1  ;;  %v2348_v28 = vld [vmem:[%s3357_s14] ss:$0 sm:$0xff] }
 0x501   : > { %v2574_v31 = vpop.f32.mrf.mxu0 }
 0x502   : > { %2597 = vmatmul.mubr.msk.bf16.vlgmr.msra.gmra.mxu0 %vm1345_vm2, %v1780_v29  ;;  %v1772_v32 = vpop.f32.mrf.mxu1 }
 0x503   : > { %v1729_v33 = vpop.f32.mrf.mxu0  ;;  %v1781_v34 = vpack.c.bf16 %v1772_v32, %v1772_v32  ;;  %2610 = vmatprep.mubr.msk.bf16.mxu0 %vm2796_vm1, %v2795_v9  ;;  %2607 = vmatpush3.bf16.msra.mxu0 %v2699_v8 }
 0x504   : > { %v2580_v35 = vpop.f32.mrf.mxu1  ;;  %2608 = vmatprep.subr.bf16.mxu0 %v2795_v9 }
 0x505   : > { %v2575_v36 = vpop.f32.mrf.mxu0  ;;  %2603 = vmatmul.mubr.msk.bf16.vlgmr.msra.gmra.mxu1 %vm1345_vm2, %v1781_v34 }
 0x506   : > { %v1775_v37 = vpop.f32.mrf.mxu1  ;;  %2630 = vmatprep.mubr.msk.bf16.mxu1 %vm2796_vm1, %v2795_v9  ;;  %2615 = vmatpush3.bf16.msra.mxu1 %v2701_v20 }
 0x507   : > { %2616 = vmatprep.subr.bf16.mxu1 %v2795_v9 }
 0x508   : > { %v2581_v39 = vpop.f32.mrf.mxu1 }
 0x50a   : > { %2617 = vmatpush3.bf16.msra.mxu1 %v2702_v21 }
 0x50b   : > { %2618 = vmatprep.subr.bf16.mxu1 %v2795_v9 }
 0x50e   : > { %2619 = vmatpush3.bf16.msra.mxu1 %v2703_v22 }
 0x50f   : > { %2620 = vmatprep.subr.bf16.mxu1 %v2795_v9 }
 0x512   : > { %2621 = vmatpush3.bf16.msra.mxu1 %v2704_v23 }
 0x513   : > { %2622 = vmatprep.subr.bf16.mxu1 %v2795_v9 }
 0x516   : > { %2623 = vmatpush3.bf16.msra.mxu1 %v2705_v24 }
 0x517   : > { %2624 = vmatprep.subr.bf16.mxu1 %v2795_v9 }
 0x51a   : > { %2625 = vmatpush3.bf16.msra.mxu1 %v2706_v25 }
 0x51b   : > { %2626 = vmatprep.subr.bf16.mxu1 %v2795_v9 }
 0x51e   : > { %2627 = vmatpush3.bf16.msra.mxu1 %v2707_v26 }
 0x51f   : > { %2628 = vmatprep.subr.bf16.mxu1 %v2795_v9 }
 0x522   : > { %2629 = vmatpush3.bf16.msra.mxu1 %v2708_v27 }
 0x5b9   : > { %v1826_v40 = vpop.f32.mrf.mxu0 }
 0x5ba   : > { %v1970_v48 = vsel %vm548_vm0, %v1826_v40, 0.0 }
 0x5bb   : > { %v2586_v41 = vpop.f32.mrf.mxu0 }
 0x5bc   : > { %v2353_v41 = vld [vmem:[%s3359_s16] ss:$0 sm:$0xff] }
 0x5bd   : > { %v1829_v43 = vpop.f32.mrf.mxu0  ;;  %v1872_v44 = vpop.f32.mrf.mxu1 }
 0x5be   : > { %v1971_v46 = vsel %vm548_vm0, %v1872_v44, 0.0 }
 0x5bf   : > { %v2587_v45 = vpop.f32.mrf.mxu0  ;;  %v2592_v42 = vpop.f32.mrf.mxu1  ;;  %v1972_v50 = vadd.f32 %v1971_v46, %v1970_v48 }
 0x5c1   : > { %v1875_v47 = vpop.f32.mrf.mxu1 }
 0x5c2   : > { %v1918_v49 = vpop.f32.mrf.mxu0 }
 0x5c3   : > { %v1973_v51 = vsel %vm548_vm0, %v1918_v49, 0.0  ;;  %v2593_v52 = vpop.f32.mrf.mxu1 }
 0x5c4   : > { %v2598_v53 = vpop.f32.mrf.mxu0  ;;  %v1974_v54 = vadd.f32 %v1973_v51, %v1972_v50 }
 0x5c5   : > { %v1964_v55 = vpop.f32.mrf.mxu1 }
 0x5c6   : > { %v1921_v56 = vpop.f32.mrf.mxu0  ;;  %v1975_v57 = vsel %vm548_vm0, %v1964_v55, 0.0 }
 0x5c7   : > { %v1976_v59 = vadd.f32 %v1975_v57, %v1974_v54  ;;  %v2604_v61 = vpop.f32.mrf.mxu1 }
 0x5c8   : > { %v2599_v62 = vpop.f32.mrf.mxu0 }
 0x5c9   : > { %v1984_v63 = vadd.f32 %v2345_v58, %v1976_v59  ;;  %v1967_v1 = vpop.f32.mrf.mxu1 }
 0x5cb   : > { %v2605_v2 = vpop.f32.mrf.mxu1  ;;  %v3238_v3 = vadd.f32 %v1984_v63, %v2941_v0  ;;  %v2700_v0 = vld [vmem:[%s3356_s13] sm:$0xff]  }
 0x5cc   : > { %2609 = vmatpush3.bf16.msra.mxu0 %v2700_v0 }
 0x5cd   : > { %v1988_v60 = vsel %vm548_vm0, %v3238_v3, 0.0 }
 0x5ce   : > { %1989 = vadd.xlane.f32.xlu0 %v1988_v60 }
 0x657   : > { %v1990_v4 = vpop.xlane.xlu0 %1989 }
 0x658   : > { %v1991_v5 = vmul.f32 0.03125, %v1990_v4 }
 0x65a   : > { %v1992_v38 = vsub.f32 %v3238_v3, %v1991_v5 }
 0x65c   : > { %v1993_v6 = vmul.f32 %v1992_v38, %v1992_v38 }
 0x65e   : > { %v1994_v7 = vsel %vm548_vm0, %v1993_v6, 0.0 }
 0x65f   : > { %1995 = vadd.xlane.f32.xlu1 %v1994_v7 }
 0x6e8   : > { %v1996_v10 = vpop.xlane.xlu1 %1995 }
 0x6e9   : > { %v1997_v11 = vmul.f32 0.03125, %v1996_v10 }
 0x6eb   : > { %v1998_v12 = vadd.f32 1e-05, %v1997_v11 }
 0x6ed   : > { %2727 = vrsqrt.f32 %v1998_v12 }
 0x6fa   : > { %v2728_v13 = vpop.eup %2727 }
 0x6fb   : > { %v2000_v15 = vmul.f32 %v2728_v13, %v1992_v38 }
 0x6fd   : > { %v2007_v17 = vmul.f32 %v2346_v14, %v2000_v15 }
 0x6ff   : > { %v2014_v18 = vadd.f32 %v2347_v16, %v2007_v17 }
 0x701   : > { %v2015_v19 = vpack.c.bf16 %v2014_v18, %v2014_v18 }
 0x703   : > { %2611 = vmatmul.mubr.msk.bf16.vlgmr.msra.gmra.mxu0 %vm548_vm0, %v2015_v19 }
 0x7c3   : > { %v2076_v29 = vpop.f32.mrf.mxu0 }
 0x7c4   : > { %v2077_v30 = vadd.f32 %v2348_v28, %v2076_v29 }
 0x7c5   : > { %v2612_v31 = vpop.f32.mrf.mxu0 }
 0x7c6   : > { %v2352_v32 = vmul.f32 -1.702, %v2077_v30 }
 0x7c7   : > { %v2079_v33 = vpop.f32.mrf.mxu0 }
 0x7c8   : > { %v2084_v34 = vmul.f32 1.442695, %v2352_v32 }
 0x7c9   : > { %v2613_v35 = vpop.f32.mrf.mxu0 }
 0x7ca   : > { %2729 = vpow2.f32 %v2084_v34 }
 0x7d7   : > { %v2730_v9 = vpop.eup %2729 }
 0x7d8   : > { %v2086_v36 = vadd.f32 1.0, %v2730_v9 }
 0x7da   : > { %2731 = vrcp.f32 %v2086_v36 }
 0x7e7   : > { %v2732_v37 = vpop.eup %2731 }
 0x7e8   : > { %v2089_v39 = vmul.f32 %v2732_v37, %v2077_v30 }
 0x7ea   : > { %v2090_v40 = vpack.c.bf16 %v2089_v39, %v2089_v39 }
 0x7ec   : > { %2631 = vmatmul.mubr.bf16.vlgmr.msra.gmra.mxu1 %v2090_v40 }
 0x8ac   : > { %v2196_v43 = vpop.f32.mrf.mxu1 }
 0x8ad   : > { %v2197_v44 = vadd.f32 %v2353_v41, %v2196_v43 }
 0x8ae   : > { %v2632_v45 = vpop.f32.mrf.mxu1 }
 0x8af   : > { %v2202_v42 = vadd.f32 %v2197_v44, %v3238_v3 }
 0x8b0   : > { %v2199_v46 = vpop.f32.mrf.mxu1 }
 0x8b1   : > { %2203 = vst.msk [vmem:[%s539_s22] sm:$0xff] %vm548_vm0, %v2202_v42 }
 0x8b2   : > { %v2633_v47 = vpop.f32.mrf.mxu1 }
 0x8b3   : > { %2746 = shalt.err (!%p2743_p3)
}
 0x8b4   : > { %s2747_s22 = scalar_lea.hbm %s3301_s2, 128  ;;  %s2751_s0 = scalar_lea.hbm %s3360_s17, 256 }
 0x8b5   : > { %p2748_p4 = scmp.ne.s32.totalorder %s3301_s2, %s2747_s22  ;;  %p2752_p9 = scmp.lt.s32.totalorder %s3301_s2, %s3360_s17 }
 0x8b6   : > { %p2753_p10 = scmp.lt.s32.totalorder %s2751_s0, %s2747_s22 }
 0x8b7   : > { %p2749_p7 = pnand %p2748_p4, %p2926_p5 }
 0x8b8   : > { %p2754_p11 = por %p2753_p10, %p2752_p9 }
 0x8b9   : > { %p2750_p8 = pneg %p2749_p7 }
 0x8bb   : > { %p2755_p12 = pnand %p2754_p11, %p2750_p8 }
 0x8bd   : > { %2758 = shalt.err (!%p2755_p12)
}
 0x8be   : > { %2634 = dma.vmem_to_hbm [thread:$0]  (%p2926_p5), %s3303_s29, 128, %s3301_s2, %s2205_s28  }
 0x8bf PF: > { %p2640_p13 = scmp.ge.s32.totalorder %s2793_s27, 2  ;;  %s2230_s19 = sand.u32 1, %s2781_s24  }
 0x8c0   : > { %s2231_s3 = scalar_lea.sflag [#allocation3], %s2230_s19 }
 0x8c1   : > { %p2637_p0 = pnand %p2640_p13, %p2930_p6 }
 0x8c3   : > { %p2638_p1 = pneg %p2637_p0 }
 0x8c5   : > { %2776 = dma.done.wait (%p2638_p1), %s2231_s3, 128  }
 0x8c6   : > { %2778 = vsyncadd (%p2638_p1), %s2231_s3, 4294967168  ;;  %s3377_s27 = sld [smem:[#allocation6_spill]]  ;;  %s3380_s24 = smov %s2785_s25 }
 0x8c7   : > { %s3378_s21 = sld [smem:[#allocation5_spill]] }
 0x8c8   : > { %s3379_s26 = sld [smem:[#allocation7_spill]] }
 0x8cc   : > { %p27_p2 = scmp.ge.s32.totalorder %s3377_s27, 4  }
 0x8cd   : > { %s3381_s25 = smov %s3378_s21 }
 0x8ce   :  { %29 = sbr.rel (!%p27_p2) target bundleno = 8 (0x8), region = 123 }
 0x8d3   :  { %2236 = vsyncpa [#allocation3], 1 }
 0x8d4   :  { %2238 = vsyncpa [#allocation3 + $0x1], 1 }

</bundles_post_ra>
